<compile_context>
chip_gen: v5e
topology: v5e:2x2
jax: 0.10.0
libtpu: 0.0.40
codegen_flags: <defaults>
</compile_context>

<pallas_src>
import jax
import jax.numpy as jnp
from jax.experimental import pallas as pl
from jax.experimental.pallas import tpu as pltpu


def _boundary_masks(N, H, W):
    """Per-tap validity masks for a 'same'-padded 3x3 conv on a flattened,
    batch-concatenated spatial axis of length N*H*W.  Row t = dy*3 + dx.
    Uses the local row (idx // W) % H so taps never cross image seams."""
    NHW = N * H * W
    idx = jnp.arange(NHW, dtype=jnp.int32)
    yy = (idx // W) % H
    xx = idx % W
    rows = []
    for dy in range(3):
        for dx in range(3):
            valid = jnp.ones((NHW,), dtype=jnp.bool_)
            if dy == 0:
                valid = jnp.logical_and(valid, yy >= 1)
            elif dy == 2:
                valid = jnp.logical_and(valid, yy <= H - 2)
            if dx == 0:
                valid = jnp.logical_and(valid, xx >= 1)
            elif dx == 2:
                valid = jnp.logical_and(valid, xx <= W - 2)
            rows.append(valid.astype(jnp.float32))
    return jnp.stack(rows, axis=0)                     # (9, N*H*W)


def _make_extractor_kernel(W, cin_pad, c1):
    def kernel(masks_ref, x_ref, w1_ref, w2_ref, b2_ref, o_ref,
               col1_ref, col2_ref):
        masks = masks_ref[...]                          # (9, NHW)
        x = x_ref[...].astype(jnp.float32)              # (cin_pad, NHW)

        def build_im2col(src, col_ref, rows):
            # Stack the 9 shifted + boundary-masked taps into a VMEM buffer so
            # each conv becomes ONE lane-dense MXU matmul.
            for dy in range(3):
                for dx in range(3):
                    t = dy * 3 + dx
                    off = (dy - 1) * W + (dx - 1)
                    shifted = src if off == 0 else jnp.roll(src, -off, axis=-1)
                    if t != 4:                          # centre tap always valid
                        shifted = shifted * masks[t:t + 1, :]
                    col_ref[pl.ds(t * rows, rows), :] = shifted

        # ---- conv1 (bias folded into the ones channel) + ReLU --------------
        build_im2col(x, col1_ref, cin_pad)
        y1 = jnp.dot(w1_ref[...], col1_ref[...],
                     preferred_element_type=jnp.float32)        # (C1, NHW)
        y1 = jnp.maximum(y1, 0.0)

        # ---- conv2 + bias + ReLU -------------------------------------------
        build_im2col(y1, col2_ref, c1)
        y2 = jnp.dot(w2_ref[...], col2_ref[...],
                     preferred_element_type=jnp.float32)        # (C2, NHW)
        y2 = jnp.maximum(y2 + b2_ref[...], 0.0)
        o_ref[...] = y2.astype(o_ref.dtype)             # lane-dense 512-wide store
    return kernel


def extractor_forward(x_nchw, params):
    """Forward pass matching Extractor.forward. x_nchw: (N, Cin, H, W) float32."""
    N, Cin, H, W = x_nchw.shape
    HW = H * W
    NHW = N * HW
    C1 = params["w1"].shape[0]
    C2 = params["w2"].shape[0]

    # Pad the contraction dim to a sublane multiple with >= 1 spare channel so
    # the conv1 bias can ride along as a constant-ones channel.
    cin_pad = -(-(Cin + 1) // 8) * 8

    # Activations: NCHW -> (Cin, N*HW), channels-first, batch*spatial on lanes.
    x_cn = jnp.transpose(x_nchw.reshape(N, Cin, HW), (1, 0, 2)).reshape(Cin, NHW)
    x_packed = jnp.concatenate(
        [x_cn.astype(jnp.float32),
         jnp.ones((1, NHW), jnp.float32),                         # bias carrier
         jnp.zeros((cin_pad - Cin - 1, NHW), jnp.float32)],
        axis=0)                                                    # (cin_pad, NHW)

    # conv1 weights packed as (C1, 9*cin_pad); b1 folded into the ones channel
    # of the centre tap (t=4).
    w1_taps = jnp.transpose(params["w1"], (2, 3, 0, 1)).reshape(9, C1, Cin)
    w1_taps = jnp.pad(w1_taps, ((0, 0), (0, 0), (0, cin_pad - Cin)))
    w1_taps = w1_taps.at[4, :, Cin].set(params["b1"])
    w1_packed = jnp.transpose(w1_taps, (1, 0, 2)).reshape(C1, 9 * cin_pad)

    # conv2 weights packed as (C2, 9*C1).
    w2_taps = jnp.transpose(params["w2"], (2, 3, 0, 1)).reshape(9, C2, C1)
    w2_packed = jnp.transpose(w2_taps, (1, 0, 2)).reshape(C2, 9 * C1)
    b2 = params["b2"].reshape(C2, 1)

    masks = _boundary_masks(N, H, W)                               # (9, NHW)

    out = pl.pallas_call(
        _make_extractor_kernel(W, cin_pad, C1),
        out_shape=jax.ShapeDtypeStruct((C2, NHW), x_nchw.dtype),
        grid_spec=pltpu.PrefetchScalarGridSpec(
            num_scalar_prefetch=0,
            grid=(1,),
            in_specs=[
                pl.BlockSpec((9, NHW), lambda i: (0, 0)),           # masks
                pl.BlockSpec((cin_pad, NHW), lambda i: (0, 0)),     # activations
                pl.BlockSpec((C1, 9 * cin_pad), lambda i: (0, 0)),  # conv1 weights
                pl.BlockSpec((C2, 9 * C1), lambda i: (0, 0)),       # conv2 weights
                pl.BlockSpec((C2, 1), lambda i: (0, 0)),            # conv2 bias
            ],
            out_specs=pl.BlockSpec((C2, NHW), lambda i: (0, 0)),
            scratch_shapes=[
                pltpu.VMEM((9 * cin_pad, NHW), jnp.float32),        # im2col conv1
                pltpu.VMEM((9 * C1, NHW), jnp.float32),             # im2col conv2
            ],
        ),
        compiler_params=pltpu.CompilerParams(
            dimension_semantics=("arbitrary",)),
    )(masks, x_packed, w1_packed, w2_packed, b2)

    # (C2, N, HW) -> (N, C2, HW) -> PyTorch flatten(start_dim=1) order.
    return out.reshape(C2, N, HW).transpose(1, 0, 2).reshape(N, C2 * HW)


def _reference_forward(x_nchw, params):
    """Pure-JAX reference (lax conv) for correctness check."""
    dn = jax.lax.conv_dimension_numbers(x_nchw.shape, params["w1"].shape,
                                        ("NCHW", "OIHW", "NCHW"))
    y = jax.lax.conv_general_dilated(x_nchw, params["w1"], (1, 1), "SAME",
                                     dimension_numbers=dn)
    y = jnp.maximum(y + params["b1"][None, :, None, None], 0.0)
    dn2 = jax.lax.conv_dimension_numbers(y.shape, params["w2"].shape,
                                         ("NCHW", "OIHW", "NCHW"))
    y = jax.lax.conv_general_dilated(y, params["w2"], (1, 1), "SAME",
                                     dimension_numbers=dn2)
    y = jnp.maximum(y + params["b2"][None, :, None, None], 0.0)
    return y.reshape(y.shape[0], -1)


if __name__ == "__main__":
    key = jax.random.PRNGKey(0)
    k_x, k_w1, k_b1, k_w2, k_b2 = jax.random.split(key, 5)

    N, Cin, H, W = 2, 4, 16, 16
    x = jax.random.normal(k_x, (N, Cin, H, W), dtype=jnp.float32)

    params = {
        "w1": jax.random.normal(k_w1, (32, Cin, 3, 3), dtype=jnp.float32) * 0.1,
        "b1": jax.random.normal(k_b1, (32,), dtype=jnp.float32) * 0.1,
        "w2": jax.random.normal(k_w2, (64, 32, 3, 3), dtype=jnp.float32) * 0.1,
        "b2": jax.random.normal(k_b2, (64,), dtype=jnp.float32) * 0.1,
    }

    out = jax.block_until_ready(jax.jit(extractor_forward)(x, params))
    assert out.shape == (N, 64 * H * W), out.shape

    ref = jax.block_until_ready(_reference_forward(x, params))
    assert jnp.allclose(out, ref, atol=1e-4, rtol=1e-4), "mismatch vs reference"

    print("KERNEL_OK")
</pallas_src>

<mosaic_0001>
module attributes {stable_mosaic.version = 11 : i64} {
  func.func @kernel(%arg0: i32, %arg1: memref<9x512xf32, #tpu.memory_space<vmem>>, %arg2: memref<8x512xf32, #tpu.memory_space<vmem>>, %arg3: memref<32x72xf32, #tpu.memory_space<vmem>>, %arg4: memref<64x288xf32, #tpu.memory_space<vmem>>, %arg5: memref<64x1xf32, #tpu.memory_space<vmem>>, %arg6: memref<64x512xf32, #tpu.memory_space<vmem>>, %arg7: memref<72x512xf32, #tpu.memory_space<vmem>>, %arg8: memref<288x512xf32, #tpu.memory_space<vmem>>) attributes {dimension_semantics = [#tpu.dimension_semantics<arbitrary>], iteration_bounds = array<i64: 1>, scalar_prefetch = 0 : i64, scratch_operands = 2 : i64, tpu.core_type = #tpu.core_type<tc>, window_params = [{pipeline_mode = #tpu.pipeline_mode<synchronous>, transform_indices = @transform_0, window_bounds = array<i64: 9, 512>}, {pipeline_mode = #tpu.pipeline_mode<synchronous>, transform_indices = @transform_1, window_bounds = array<i64: 8, 512>}, {pipeline_mode = #tpu.pipeline_mode<synchronous>, transform_indices = @transform_2, window_bounds = array<i64: 32, 72>}, {pipeline_mode = #tpu.pipeline_mode<synchronous>, transform_indices = @transform_3, window_bounds = array<i64: 64, 288>}, {pipeline_mode = #tpu.pipeline_mode<synchronous>, transform_indices = @transform_4, window_bounds = array<i64: 64, 1>}, {pipeline_mode = #tpu.pipeline_mode<synchronous>, transform_indices = @transform_5, window_bounds = array<i64: 64, 512>}]} {
    %c0 = arith.constant 0 : index
    %c0_0 = arith.constant 0 : index
    %0 = vector.load %arg1[%c0, %c0_0] : memref<9x512xf32, #tpu.memory_space<vmem>>, vector<9x512xf32>
    %c0_1 = arith.constant 0 : index
    %c0_2 = arith.constant 0 : index
    %1 = vector.load %arg2[%c0_1, %c0_2] : memref<8x512xf32, #tpu.memory_space<vmem>>, vector<8x512xf32>
    %2 = vector.extract_strided_slice %1 {offsets = [0, 495], sizes = [8, 17], strides = [1, 1]} : vector<8x512xf32> to vector<8x17xf32>
    %3 = vector.extract_strided_slice %1 {offsets = [0, 0], sizes = [8, 495], strides = [1, 1]} : vector<8x512xf32> to vector<8x495xf32>
    %4 = tpu.concatenate %2, %3 in 1 : vector<8x17xf32>, vector<8x495xf32> -> vector<8x512xf32>
    %5 = vector.extract_strided_slice %0 {offsets = [0, 0], sizes = [1, 512], strides = [1, 1]} : vector<9x512xf32> to vector<1x512xf32>
    %6 = vector.broadcast %5 : vector<1x512xf32> to vector<8x512xf32>
    %7 = arith.mulf %4, %6 : vector<8x512xf32>
    %c0_3 = arith.constant 0 : index
    %c0_4 = arith.constant 0 : index
    %8 = vector.load %arg7[%c0_3, %c0_4] : memref<72x512xf32, #tpu.memory_space<vmem>>, vector<8x512xf32>
    tpu.vector_store %arg7[%c0_3, %c0_4], %7 {strides = array<i32>} : memref<72x512xf32, #tpu.memory_space<vmem>>, vector<8x512xf32>,
    %9 = vector.extract_strided_slice %1 {offsets = [0, 496], sizes = [8, 16], strides = [1, 1]} : vector<8x512xf32> to vector<8x16xf32>
    %10 = vector.extract_strided_slice %1 {offsets = [0, 0], sizes = [8, 496], strides = [1, 1]} : vector<8x512xf32> to vector<8x496xf32>
    %11 = tpu.concatenate %9, %10 in 1 : vector<8x16xf32>, vector<8x496xf32> -> vector<8x512xf32>
    %12 = vector.extract_strided_slice %0 {offsets = [1, 0], sizes = [1, 512], strides = [1, 1]} : vector<9x512xf32> to vector<1x512xf32>
    %13 = vector.broadcast %12 : vector<1x512xf32> to vector<8x512xf32>
    %14 = arith.mulf %11, %13 : vector<8x512xf32>
    %c8 = arith.constant 8 : index
    %c0_5 = arith.constant 0 : index
    %15 = vector.load %arg7[%c8, %c0_5] : memref<72x512xf32, #tpu.memory_space<vmem>>, vector<8x512xf32>
    tpu.vector_store %arg7[%c8, %c0_5], %14 {strides = array<i32>} : memref<72x512xf32, #tpu.memory_space<vmem>>, vector<8x512xf32>,
    %16 = vector.extract_strided_slice %1 {offsets = [0, 497], sizes = [8, 15], strides = [1, 1]} : vector<8x512xf32> to vector<8x15xf32>
    %17 = vector.extract_strided_slice %1 {offsets = [0, 0], sizes = [8, 497], strides = [1, 1]} : vector<8x512xf32> to vector<8x497xf32>
    %18 = tpu.concatenate %16, %17 in 1 : vector<8x15xf32>, vector<8x497xf32> -> vector<8x512xf32>
    %19 = vector.extract_strided_slice %0 {offsets = [2, 0], sizes = [1, 512], strides = [1, 1]} : vector<9x512xf32> to vector<1x512xf32>
    %20 = vector.broadcast %19 : vector<1x512xf32> to vector<8x512xf32>
    %21 = arith.mulf %18, %20 : vector<8x512xf32>
    %c16 = arith.constant 16 : index
    %c0_6 = arith.constant 0 : index
    %22 = vector.load %arg7[%c16, %c0_6] : memref<72x512xf32, #tpu.memory_space<vmem>>, vector<8x512xf32>
    tpu.vector_store %arg7[%c16, %c0_6], %21 {strides = array<i32>} : memref<72x512xf32, #tpu.memory_space<vmem>>, vector<8x512xf32>,
    %23 = vector.extract_strided_slice %1 {offsets = [0, 511], sizes = [8, 1], strides = [1, 1]} : vector<8x512xf32> to vector<8x1xf32>
    %24 = vector.extract_strided_slice %1 {offsets = [0, 0], sizes = [8, 511], strides = [1, 1]} : vector<8x512xf32> to vector<8x511xf32>
    %25 = tpu.concatenate %23, %24 in 1 : vector<8x1xf32>, vector<8x511xf32> -> vector<8x512xf32>
    %26 = vector.extract_strided_slice %0 {offsets = [3, 0], sizes = [1, 512], strides = [1, 1]} : vector<9x512xf32> to vector<1x512xf32>
    %27 = vector.broadcast %26 : vector<1x512xf32> to vector<8x512xf32>
    %28 = arith.mulf %25, %27 : vector<8x512xf32>
    %c24 = arith.constant 24 : index
    %c0_7 = arith.constant 0 : index
    %29 = vector.load %arg7[%c24, %c0_7] : memref<72x512xf32, #tpu.memory_space<vmem>>, vector<8x512xf32>
    tpu.vector_store %arg7[%c24, %c0_7], %28 {strides = array<i32>} : memref<72x512xf32, #tpu.memory_space<vmem>>, vector<8x512xf32>,
    %c32 = arith.constant 32 : index
    %c0_8 = arith.constant 0 : index
    %30 = vector.load %arg7[%c32, %c0_8] : memref<72x512xf32, #tpu.memory_space<vmem>>, vector<8x512xf32>
    tpu.vector_store %arg7[%c32, %c0_8], %1 {strides = array<i32>} : memref<72x512xf32, #tpu.memory_space<vmem>>, vector<8x512xf32>,
    %31 = vector.extract_strided_slice %1 {offsets = [0, 1], sizes = [8, 511], strides = [1, 1]} : vector<8x512xf32> to vector<8x511xf32>
    %32 = vector.extract_strided_slice %1 {offsets = [0, 0], sizes = [8, 1], strides = [1, 1]} : vector<8x512xf32> to vector<8x1xf32>
    %33 = tpu.concatenate %31, %32 in 1 : vector<8x511xf32>, vector<8x1xf32> -> vector<8x512xf32>
    %34 = vector.extract_strided_slice %0 {offsets = [5, 0], sizes = [1, 512], strides = [1, 1]} : vector<9x512xf32> to vector<1x512xf32>
    %35 = vector.broadcast %34 : vector<1x512xf32> to vector<8x512xf32>
    %36 = arith.mulf %33, %35 : vector<8x512xf32>
    %c40 = arith.constant 40 : index
    %c0_9 = arith.constant 0 : index
    %37 = vector.load %arg7[%c40, %c0_9] : memref<72x512xf32, #tpu.memory_space<vmem>>, vector<8x512xf32>
    tpu.vector_store %arg7[%c40, %c0_9], %36 {strides = array<i32>} : memref<72x512xf32, #tpu.memory_space<vmem>>, vector<8x512xf32>,
    %38 = vector.extract_strided_slice %1 {offsets = [0, 15], sizes = [8, 497], strides = [1, 1]} : vector<8x512xf32> to vector<8x497xf32>
    %39 = vector.extract_strided_slice %1 {offsets = [0, 0], sizes = [8, 15], strides = [1, 1]} : vector<8x512xf32> to vector<8x15xf32>
    %40 = tpu.concatenate %38, %39 in 1 : vector<8x497xf32>, vector<8x15xf32> -> vector<8x512xf32>
    %41 = vector.extract_strided_slice %0 {offsets = [6, 0], sizes = [1, 512], strides = [1, 1]} : vector<9x512xf32> to vector<1x512xf32>
    %42 = vector.broadcast %41 : vector<1x512xf32> to vector<8x512xf32>
    %43 = arith.mulf %40, %42 : vector<8x512xf32>
    %c48 = arith.constant 48 : index
    %c0_10 = arith.constant 0 : index
    %44 = vector.load %arg7[%c48, %c0_10] : memref<72x512xf32, #tpu.memory_space<vmem>>, vector<8x512xf32>
    tpu.vector_store %arg7[%c48, %c0_10], %43 {strides = array<i32>} : memref<72x512xf32, #tpu.memory_space<vmem>>, vector<8x512xf32>,
    %45 = vector.extract_strided_slice %1 {offsets = [0, 16], sizes = [8, 496], strides = [1, 1]} : vector<8x512xf32> to vector<8x496xf32>
    %46 = vector.extract_strided_slice %1 {offsets = [0, 0], sizes = [8, 16], strides = [1, 1]} : vector<8x512xf32> to vector<8x16xf32>
    %47 = tpu.concatenate %45, %46 in 1 : vector<8x496xf32>, vector<8x16xf32> -> vector<8x512xf32>
    %48 = vector.extract_strided_slice %0 {offsets = [7, 0], sizes = [1, 512], strides = [1, 1]} : vector<9x512xf32> to vector<1x512xf32>
    %49 = vector.broadcast %48 : vector<1x512xf32> to vector<8x512xf32>
    %50 = arith.mulf %47, %49 : vector<8x512xf32>
    %c56 = arith.constant 56 : index
    %c0_11 = arith.constant 0 : index
    %51 = vector.load %arg7[%c56, %c0_11] : memref<72x512xf32, #tpu.memory_space<vmem>>, vector<8x512xf32>
    tpu.vector_store %arg7[%c56, %c0_11], %50 {strides = array<i32>} : memref<72x512xf32, #tpu.memory_space<vmem>>, vector<8x512xf32>,
    %52 = vector.extract_strided_slice %1 {offsets = [0, 17], sizes = [8, 495], strides = [1, 1]} : vector<8x512xf32> to vector<8x495xf32>
    %53 = vector.extract_strided_slice %1 {offsets = [0, 0], sizes = [8, 17], strides = [1, 1]} : vector<8x512xf32> to vector<8x17xf32>
    %54 = tpu.concatenate %52, %53 in 1 : vector<8x495xf32>, vector<8x17xf32> -> vector<8x512xf32>
    %55 = vector.extract_strided_slice %0 {offsets = [8, 0], sizes = [1, 512], strides = [1, 1]} : vector<9x512xf32> to vector<1x512xf32>
    %56 = vector.broadcast %55 : vector<1x512xf32> to vector<8x512xf32>
    %57 = arith.mulf %54, %56 : vector<8x512xf32>
    %c64 = arith.constant 64 : index
    %c0_12 = arith.constant 0 : index
    %58 = vector.load %arg7[%c64, %c0_12] : memref<72x512xf32, #tpu.memory_space<vmem>>, vector<8x512xf32>
    tpu.vector_store %arg7[%c64, %c0_12], %57 {strides = array<i32>} : memref<72x512xf32, #tpu.memory_space<vmem>>, vector<8x512xf32>,
    %c0_13 = arith.constant 0 : index
    %c0_14 = arith.constant 0 : index
    %59 = vector.load %arg3[%c0_13, %c0_14] : memref<32x72xf32, #tpu.memory_space<vmem>>, vector<32x72xf32>
    %c0_15 = arith.constant 0 : index
    %c0_16 = arith.constant 0 : index
    %60 = vector.load %arg7[%c0_15, %c0_16] : memref<72x512xf32, #tpu.memory_space<vmem>>, vector<72x512xf32>
    %cst = arith.constant dense<0.000000e+00> : vector<32x512xf32>
    %61 = tpu.matmul %59, %60, %cst {dimension_numbers = #tpu.dot_dimension_numbers<[1], [0], [0], [1], [0, 0, 1, 1], [], []>} : vector<32x72xf32>, vector<72x512xf32>, vector<32x512xf32> -> vector<32x512xf32>
    %cst_17 = arith.constant 0.000000e+00 : f32
    %62 = vector.broadcast %cst_17 : f32 to vector<32x512xf32>
    %63 = arith.maximumf %61, %62 : vector<32x512xf32>
    %64 = vector.extract_strided_slice %63 {offsets = [0, 495], sizes = [32, 17], strides = [1, 1]} : vector<32x512xf32> to vector<32x17xf32>
    %65 = vector.extract_strided_slice %63 {offsets = [0, 0], sizes = [32, 495], strides = [1, 1]} : vector<32x512xf32> to vector<32x495xf32>
    %66 = tpu.concatenate %64, %65 in 1 : vector<32x17xf32>, vector<32x495xf32> -> vector<32x512xf32>
    %67 = vector.extract_strided_slice %0 {offsets = [0, 0], sizes = [1, 512], strides = [1, 1]} : vector<9x512xf32> to vector<1x512xf32>
    %68 = vector.broadcast %67 : vector<1x512xf32> to vector<32x512xf32>
    %69 = arith.mulf %66, %68 : vector<32x512xf32>
    %c0_18 = arith.constant 0 : index
    %c0_19 = arith.constant 0 : index
    %70 = vector.load %arg8[%c0_18, %c0_19] : memref<288x512xf32, #tpu.memory_space<vmem>>, vector<32x512xf32>
    tpu.vector_store %arg8[%c0_18, %c0_19], %69 {strides = array<i32>} : memref<288x512xf32, #tpu.memory_space<vmem>>, vector<32x512xf32>,
    %71 = vector.extract_strided_slice %63 {offsets = [0, 496], sizes = [32, 16], strides = [1, 1]} : vector<32x512xf32> to vector<32x16xf32>
    %72 = vector.extract_strided_slice %63 {offsets = [0, 0], sizes = [32, 496], strides = [1, 1]} : vector<32x512xf32> to vector<32x496xf32>
    %73 = tpu.concatenate %71, %72 in 1 : vector<32x16xf32>, vector<32x496xf32> -> vector<32x512xf32>
    %74 = vector.extract_strided_slice %0 {offsets = [1, 0], sizes = [1, 512], strides = [1, 1]} : vector<9x512xf32> to vector<1x512xf32>
    %75 = vector.broadcast %74 : vector<1x512xf32> to vector<32x512xf32>
    %76 = arith.mulf %73, %75 : vector<32x512xf32>
    %c32_20 = arith.constant 32 : index
    %c0_21 = arith.constant 0 : index
    %77 = vector.load %arg8[%c32_20, %c0_21] : memref<288x512xf32, #tpu.memory_space<vmem>>, vector<32x512xf32>
    tpu.vector_store %arg8[%c32_20, %c0_21], %76 {strides = array<i32>} : memref<288x512xf32, #tpu.memory_space<vmem>>, vector<32x512xf32>,
    %78 = vector.extract_strided_slice %63 {offsets = [0, 497], sizes = [32, 15], strides = [1, 1]} : vector<32x512xf32> to vector<32x15xf32>
    %79 = vector.extract_strided_slice %63 {offsets = [0, 0], sizes = [32, 497], strides = [1, 1]} : vector<32x512xf32> to vector<32x497xf32>
    %80 = tpu.concatenate %78, %79 in 1 : vector<32x15xf32>, vector<32x497xf32> -> vector<32x512xf32>
    %81 = vector.extract_strided_slice %0 {offsets = [2, 0], sizes = [1, 512], strides = [1, 1]} : vector<9x512xf32> to vector<1x512xf32>
    %82 = vector.broadcast %81 : vector<1x512xf32> to vector<32x512xf32>
    %83 = arith.mulf %80, %82 : vector<32x512xf32>
    %c64_22 = arith.constant 64 : index
    %c0_23 = arith.constant 0 : index
    %84 = vector.load %arg8[%c64_22, %c0_23] : memref<288x512xf32, #tpu.memory_space<vmem>>, vector<32x512xf32>
    tpu.vector_store %arg8[%c64_22, %c0_23], %83 {strides = array<i32>} : memref<288x512xf32, #tpu.memory_space<vmem>>, vector<32x512xf32>,
    %85 = vector.extract_strided_slice %63 {offsets = [0, 511], sizes = [32, 1], strides = [1, 1]} : vector<32x512xf32> to vector<32x1xf32>
    %86 = vector.extract_strided_slice %63 {offsets = [0, 0], sizes = [32, 511], strides = [1, 1]} : vector<32x512xf32> to vector<32x511xf32>
    %87 = tpu.concatenate %85, %86 in 1 : vector<32x1xf32>, vector<32x511xf32> -> vector<32x512xf32>
    %88 = vector.extract_strided_slice %0 {offsets = [3, 0], sizes = [1, 512], strides = [1, 1]} : vector<9x512xf32> to vector<1x512xf32>
    %89 = vector.broadcast %88 : vector<1x512xf32> to vector<32x512xf32>
    %90 = arith.mulf %87, %89 : vector<32x512xf32>
    %c96 = arith.constant 96 : index
    %c0_24 = arith.constant 0 : index
    %91 = vector.load %arg8[%c96, %c0_24] : memref<288x512xf32, #tpu.memory_space<vmem>>, vector<32x512xf32>
    tpu.vector_store %arg8[%c96, %c0_24], %90 {strides = array<i32>} : memref<288x512xf32, #tpu.memory_space<vmem>>, vector<32x512xf32>,
    %c128 = arith.constant 128 : index
    %c0_25 = arith.constant 0 : index
    %92 = vector.load %arg8[%c128, %c0_25] : memref<288x512xf32, #tpu.memory_space<vmem>>, vector<32x512xf32>
    tpu.vector_store %arg8[%c128, %c0_25], %63 {strides = array<i32>} : memref<288x512xf32, #tpu.memory_space<vmem>>, vector<32x512xf32>,
    %93 = vector.extract_strided_slice %63 {offsets = [0, 1], sizes = [32, 511], strides = [1, 1]} : vector<32x512xf32> to vector<32x511xf32>
    %94 = vector.extract_strided_slice %63 {offsets = [0, 0], sizes = [32, 1], strides = [1, 1]} : vector<32x512xf32> to vector<32x1xf32>
    %95 = tpu.concatenate %93, %94 in 1 : vector<32x511xf32>, vector<32x1xf32> -> vector<32x512xf32>
    %96 = vector.extract_strided_slice %0 {offsets = [5, 0], sizes = [1, 512], strides = [1, 1]} : vector<9x512xf32> to vector<1x512xf32>
    %97 = vector.broadcast %96 : vector<1x512xf32> to vector<32x512xf32>
    %98 = arith.mulf %95, %97 : vector<32x512xf32>
    %c160 = arith.constant 160 : index
    %c0_26 = arith.constant 0 : index
    %99 = vector.load %arg8[%c160, %c0_26] : memref<288x512xf32, #tpu.memory_space<vmem>>, vector<32x512xf32>
    tpu.vector_store %arg8[%c160, %c0_26], %98 {strides = array<i32>} : memref<288x512xf32, #tpu.memory_space<vmem>>, vector<32x512xf32>,
    %100 = vector.extract_strided_slice %63 {offsets = [0, 15], sizes = [32, 497], strides = [1, 1]} : vector<32x512xf32> to vector<32x497xf32>
    %101 = vector.extract_strided_slice %63 {offsets = [0, 0], sizes = [32, 15], strides = [1, 1]} : vector<32x512xf32> to vector<32x15xf32>
    %102 = tpu.concatenate %100, %101 in 1 : vector<32x497xf32>, vector<32x15xf32> -> vector<32x512xf32>
    %103 = vector.extract_strided_slice %0 {offsets = [6, 0], sizes = [1, 512], strides = [1, 1]} : vector<9x512xf32> to vector<1x512xf32>
    %104 = vector.broadcast %103 : vector<1x512xf32> to vector<32x512xf32>
    %105 = arith.mulf %102, %104 : vector<32x512xf32>
    %c192 = arith.constant 192 : index
    %c0_27 = arith.constant 0 : index
    %106 = vector.load %arg8[%c192, %c0_27] : memref<288x512xf32, #tpu.memory_space<vmem>>, vector<32x512xf32>
    tpu.vector_store %arg8[%c192, %c0_27], %105 {strides = array<i32>} : memref<288x512xf32, #tpu.memory_space<vmem>>, vector<32x512xf32>,
    %107 = vector.extract_strided_slice %63 {offsets = [0, 16], sizes = [32, 496], strides = [1, 1]} : vector<32x512xf32> to vector<32x496xf32>
    %108 = vector.extract_strided_slice %63 {offsets = [0, 0], sizes = [32, 16], strides = [1, 1]} : vector<32x512xf32> to vector<32x16xf32>
    %109 = tpu.concatenate %107, %108 in 1 : vector<32x496xf32>, vector<32x16xf32> -> vector<32x512xf32>
    %110 = vector.extract_strided_slice %0 {offsets = [7, 0], sizes = [1, 512], strides = [1, 1]} : vector<9x512xf32> to vector<1x512xf32>
    %111 = vector.broadcast %110 : vector<1x512xf32> to vector<32x512xf32>
    %112 = arith.mulf %109, %111 : vector<32x512xf32>
    %c224 = arith.constant 224 : index
    %c0_28 = arith.constant 0 : index
    %113 = vector.load %arg8[%c224, %c0_28] : memref<288x512xf32, #tpu.memory_space<vmem>>, vector<32x512xf32>
    tpu.vector_store %arg8[%c224, %c0_28], %112 {strides = array<i32>} : memref<288x512xf32, #tpu.memory_space<vmem>>, vector<32x512xf32>,
    %114 = vector.extract_strided_slice %63 {offsets = [0, 17], sizes = [32, 495], strides = [1, 1]} : vector<32x512xf32> to vector<32x495xf32>
    %115 = vector.extract_strided_slice %63 {offsets = [0, 0], sizes = [32, 17], strides = [1, 1]} : vector<32x512xf32> to vector<32x17xf32>
    %116 = tpu.concatenate %114, %115 in 1 : vector<32x495xf32>, vector<32x17xf32> -> vector<32x512xf32>
    %117 = vector.extract_strided_slice %0 {offsets = [8, 0], sizes = [1, 512], strides = [1, 1]} : vector<9x512xf32> to vector<1x512xf32>
    %118 = vector.broadcast %117 : vector<1x512xf32> to vector<32x512xf32>
    %119 = arith.mulf %116, %118 : vector<32x512xf32>
    %c256 = arith.constant 256 : index
    %c0_29 = arith.constant 0 : index
    %120 = vector.load %arg8[%c256, %c0_29] : memref<288x512xf32, #tpu.memory_space<vmem>>, vector<32x512xf32>
    tpu.vector_store %arg8[%c256, %c0_29], %119 {strides = array<i32>} : memref<288x512xf32, #tpu.memory_space<vmem>>, vector<32x512xf32>,
    %c0_30 = arith.constant 0 : index
    %c0_31 = arith.constant 0 : index
    %121 = vector.load %arg4[%c0_30, %c0_31] : memref<64x288xf32, #tpu.memory_space<vmem>>, vector<64x288xf32>
    %c0_32 = arith.constant 0 : index
    %c0_33 = arith.constant 0 : index
    %122 = vector.load %arg8[%c0_32, %c0_33] : memref<288x512xf32, #tpu.memory_space<vmem>>, vector<288x512xf32>
    %cst_34 = arith.constant dense<0.000000e+00> : vector<64x512xf32>
    %123 = tpu.matmul %121, %122, %cst_34 {dimension_numbers = #tpu.dot_dimension_numbers<[1], [0], [0], [1], [0, 0, 1, 1], [], []>} : vector<64x288xf32>, vector<288x512xf32>, vector<64x512xf32> -> vector<64x512xf32>
    %c0_35 = arith.constant 0 : index
    %c0_36 = arith.constant 0 : index
    %124 = vector.load %arg5[%c0_35, %c0_36] : memref<64x1xf32, #tpu.memory_space<vmem>>, vector<64x1xf32>
    %125 = vector.broadcast %124 : vector<64x1xf32> to vector<64x512xf32>
    %126 = arith.addf %123, %125 : vector<64x512xf32>
    %cst_37 = arith.constant 0.000000e+00 : f32
    %127 = vector.broadcast %cst_37 : f32 to vector<64x512xf32>
    %128 = arith.maximumf %126, %127 : vector<64x512xf32>
    %c0_38 = arith.constant 0 : index
    %c0_39 = arith.constant 0 : index
    %129 = vector.load %arg6[%c0_38, %c0_39] : memref<64x512xf32, #tpu.memory_space<vmem>>, vector<64x512xf32>
    tpu.vector_store %arg6[%c0_38, %c0_39], %128 {strides = array<i32>} : memref<64x512xf32, #tpu.memory_space<vmem>>, vector<64x512xf32>,
    return
  }
  func.func @transform_0(%arg0: i32) -> (i32, i32) {
    %c0_i32 = arith.constant 0 : i32
    %c0_i32_0 = arith.constant 0 : i32
    %c0_i32_1 = arith.constant 0 : i32
    return %c0_i32, %c0_i32_0 : i32, i32
  }
  func.func @transform_1(%arg0: i32) -> (i32, i32) {
    %c0_i32 = arith.constant 0 : i32
    %c0_i32_0 = arith.constant 0 : i32
    %c0_i32_1 = arith.constant 0 : i32
    return %c0_i32, %c0_i32_0 : i32, i32
  }
  func.func @transform_2(%arg0: i32) -> (i32, i32) {
    %c0_i32 = arith.constant 0 : i32
    %c0_i32_0 = arith.constant 0 : i32
    %c0_i32_1 = arith.constant 0 : i32
    return %c0_i32, %c0_i32_0 : i32, i32
  }
  func.func @transform_3(%arg0: i32) -> (i32, i32) {
    %c0_i32 = arith.constant 0 : i32
    %c0_i32_0 = arith.constant 0 : i32
    %c0_i32_1 = arith.constant 0 : i32
    return %c0_i32, %c0_i32_0 : i32, i32
  }
  func.func @transform_4(%arg0: i32) -> (i32, i32) {
    %c0_i32 = arith.constant 0 : i32
    %c0_i32_0 = arith.constant 0 : i32
    %c0_i32_1 = arith.constant 0 : i32
    return %c0_i32, %c0_i32_0 : i32, i32
  }
  func.func @transform_5(%arg0: i32) -> (i32, i32) {
    %c0_i32 = arith.constant 0 : i32
    %c0_i32_0 = arith.constant 0 : i32
    %c0_i32_1 = arith.constant 0 : i32
    return %c0_i32, %c0_i32_0 : i32, i32
  }
}

</mosaic_0001>

<bundles_post_ra>
// kernel: extractor_forward.1
= control target key start
LH: loop header
LB: loop body
LE: loop exit
PB: predicated region body
PF: predicated region fallthrough
CT: control target
= control target key end

     0   :  { %s2166_s22 = smov 111   ;;  %s2167_s23 = smov 112   ;;  %vm258_vm0 = vcmask 908288   ;;  %vm228_vm1 = vcmask 916480   ;;  %vm198_vm2 = vcmask 924672   ;;  %vm168_vm3 = vcmask 1039360   ;;  %s3931_s1 = inlined_call_operand.vmem [shape: f32[8,512], index: 1, kind: input, shape index: {}]   ;;  %s3932_s0 = inlined_call_operand.vmem [shape: f32[9,512], index: 0, kind: input, shape index: {}]   ;;  %s3933_s2 = inlined_call_operand.vmem [shape: f32[32,72], index: 2, kind: input, shape index: {}]   ;;  %s3934_s3 = inlined_call_operand.vmem [shape: f32[64,288], index: 3, kind: input, shape index: {}]   ;;  %s3935_s4 = inlined_call_operand.vmem [shape: f32[64,1], index: 4, kind: input, shape index: {}]   ;;  %s3936_s5 = inlined_call_operand.vmem [shape: f32[64,512], index: 5, kind: output, shape index: {}]  }
   0x1   :  { %v2208_v0 = vld [vmem:[%s3931_s1 + $0x10] sm:$0xff]  ;;  %v2213_v1 = vld [vmem:[%s3931_s1] sm:$0xff]  ;;  %v2224_v2 = vld [vmem:[%s3931_s1 + $0x18] sm:$0xff]  ;;  %s2168_s28 = smov 113   ;;  %s2170_s29 = smov 1   ;;  %vm135_vm4 = vcmask 7168  }
   0x2   :  { %254 = vrot.lane.b32.xlu1 %v2208_v0, %s2166_s22  ;;  %250 = vrot.lane.b32.xlu0 %v2213_v1, %s2166_s22  ;;  %v2229_v3 = vld [vmem:[%s3931_s1 + $0x8] sm:$0xff]  ;;  %s2169_s1 = smov 127   ;;  %s2171_s30 = smov 15   ;;  %v2292_v9 = vld [vmem:[%s3932_s0 + $0x20] ss:$0 sm:$0xff]  ;;  %vm105_vm5 = vcmask 121856  }
   0x3   :  { %220 = vrot.lane.b32.xlu2 %v2213_v1, %s2167_s23  ;;  %s2172_s6 = smov 16   ;;  %s2173_s7 = smov 17   ;;  %4044 = vst [vmem:[#allocation4_spill] sm:$0xff] %v2292_v9  ;;  %v2297_v10 = vld [vmem:[%s3932_s0] sm:$0xff]  ;;  %v2159_v12 = vld [vmem:[%s3932_s0 + $0x28] ss:$0 sm:$0xff] }
   0x4   :  { %v2160_v13 = vld [vmem:[%s3932_s0 + $0x30] ss:$0 sm:$0xff]  ;;  %v2161_v14 = vld [vmem:[%s3932_s0 + $0x38] ss:$0 sm:$0xff]  ;;  %v2310_v18 = vperm.slane %v2297_v10, 7  ;;  %v2320_v27 = vld [vmem:[%s3932_s0 + $0x8] sm:$0xff] }
   0x5   :  { %v2325_v28 = vld [vmem:[%s3932_s0 + $0x10] sm:$0xff]  ;;  %v2330_v29 = vld [vmem:[%s3932_s0 + $0x18] sm:$0xff]  ;;  %v2334_v31 = vperm.slane %v2320_v27, 7  ;;  %v2354_v46 = vperm.slane %v2297_v10, 6  ;;  %v2357_v47 = vperm.slane %v2320_v27, 6  ;;  %v2369_v58 = vperm.slane %v2297_v10, 5 }
   0x6   :  { %v2337_v32 = vperm.slane %v2325_v28, 7  ;;  %v2340_v33 = vperm.slane %v2330_v29, 7  ;;  %v2343_v34 = vperm.slane %v2330_v29, 6  ;;  %v2360_v48 = vperm.slane %v2325_v28, 6 }
   0x7   :  { %4045 = vst [vmem:[#allocation5_spill] sm:$0xff] %v2334_v31  ;;  %v2372_v59 = vperm.slane %v2320_v27, 5  ;;  %vm75_vm6 = vcmask 130048   ;;  %vm45_vm7 = vcmask 138240   ;;  %vm320_vm8 = vcmask 588800  }
   0x8   :  { %4046 = vst [vmem:[#allocation6_spill] sm:$0xff] %v2337_v32  ;;  %vm1513_vm9 = vcmask 261120  }
   0x9   :  { %4047 = vst [vmem:[#allocation7_spill] sm:$0xff] %v2340_v33 }
   0xa   :  { %256 = vrot.lane.b32.xlu1 %v2224_v2, %s2166_s22  ;;  %252 = vrot.lane.b32.xlu0 %v2229_v3, %s2166_s22  ;;  %4048 = vst [vmem:[#allocation8_spill] sm:$0xff] %v2343_v34 }
   0xb   :  { %222 = vrot.lane.b32.xlu2 %v2229_v3, %s2167_s23  ;;  %4049 = vst [vmem:[#allocation9_spill] sm:$0xff] %v2357_v47 }
   0xc   :  { %4050 = vst [vmem:[#allocation10_spill] sm:$0xff] %v2360_v48 }
   0xd   :  { %4051 = vst [vmem:[#allocation11_spill] sm:$0xff] %v2372_v59 }
  0x12   :  { %226 = vrot.lane.b32.xlu1 %v2224_v2, %s2167_s23  ;;  %224 = vrot.lane.b32.xlu0 %v2208_v0, %s2167_s23 }
  0x13   :  { %190 = vrot.lane.b32.xlu2 %v2213_v1, %s2168_s28 }
  0x1a   :  { %194 = vrot.lane.b32.xlu1 %v2208_v0, %s2168_s28  ;;  %192 = vrot.lane.b32.xlu0 %v2229_v3, %s2168_s28 }
  0x1b   :  { %196 = vrot.lane.b32.xlu2 %v2224_v2, %s2168_s28 }
  0x22   :  { %162 = vrot.lane.b32.xlu1 %v2229_v3, %s2169_s1  ;;  %160 = vrot.lane.b32.xlu0 %v2213_v1, %s2169_s1 }
  0x23   :  { %164 = vrot.lane.b32.xlu2 %v2208_v0, %s2169_s1 }
  0x2a   :  { %126 = vrot.lane.b32.xlu1 %v2224_v2, %s2170_s29  ;;  %166 = vrot.lane.b32.xlu0 %v2224_v2, %s2169_s1 }
  0x2b   :  { %129 = vrot.lane.b32.xlu2 %v2213_v1, %s2170_s29 }
  0x32   :  { %133 = vrot.lane.b32.xlu1 %v2208_v0, %s2170_s29  ;;  %131 = vrot.lane.b32.xlu0 %v2229_v3, %s2170_s29 }
  0x33   :  { %96 = vrot.lane.b32.xlu2 %v2224_v2, %s2171_s30 }
  0x3a   :  { %101 = vrot.lane.b32.xlu1 %v2229_v3, %s2171_s30  ;;  %99 = vrot.lane.b32.xlu0 %v2213_v1, %s2171_s30 }
  0x3b   :  { %103 = vrot.lane.b32.xlu2 %v2208_v0, %s2171_s30 }
  0x42   :  { %69 = vrot.lane.b32.xlu1 %v2213_v1, %s2172_s6  ;;  %66 = vrot.lane.b32.xlu0 %v2224_v2, %s2172_s6 }
  0x43   :  { %71 = vrot.lane.b32.xlu2 %v2229_v3, %s2172_s6 }
  0x4a   :  { %33 = vrot.lane.b32.xlu1 %v2224_v2, %s2173_s7  ;;  %73 = vrot.lane.b32.xlu0 %v2208_v0, %s2172_s6 }
  0x4b   :  { %39 = vrot.lane.b32.xlu2 %v2213_v1, %s2173_s7 }
  0x52   :  { %43 = vrot.lane.b32.xlu1 %v2208_v0, %s2173_s7  ;;  %41 = vrot.lane.b32.xlu0 %v2229_v3, %s2173_s7 }
  0x5d   :  { %v221_v4 = vpop.permute.xlu2 %220 }
  0x65   :  { %v223_v5 = vpop.permute.xlu2 %222 }
  0x66   :  { %v229_v17 = vsel %vm228_vm1, %v221_v4, %v223_v5 }
  0x67   :  { %v242_v30 = vmul.f32 %v2310_v18, %v229_v17 }
  0x6d   :  { %v191_v6 = vpop.permute.xlu2 %190 }
  0x74   :  { %v255_v7 = vpop.permute.xlu1 %254  ;;  %v251_v8 = vpop.permute.xlu0 %250 }
  0x75   :  { %v197_v11 = vpop.permute.xlu2 %196 }
  0x76   :  { %v207_v38 = vsel %vm198_vm2, %v197_v11, %v191_v6 }
  0x77   :  { %v215_v45 = vmul.f32 %v2343_v34, %v207_v38 }
  0x7c   :  { %v257_v15 = vpop.permute.xlu1 %256  ;;  %v253_v16 = vpop.permute.xlu0 %252 }
  0x7d   :  { %v259_v19 = vsel %vm258_vm0, %v251_v8, %v253_v16  ;;  %v260_v20 = vsel %vm258_vm0, %v253_v16, %v255_v7  ;;  %v261_v21 = vsel %vm258_vm0, %v255_v7, %v257_v15  ;;  %v267_v22 = vsel %vm258_vm0, %v257_v15, %v251_v8  ;;  %v165_v35 = vpop.permute.xlu2 %164 }
  0x7e   :  { %v272_v23 = vmul.f32 %v2292_v9, %v259_v19  ;;  %v273_v24 = vmul.f32 %v2159_v12, %v260_v20  ;;  %v274_v25 = vmul.f32 %v2160_v13, %v261_v21  ;;  %v275_v26 = vmul.f32 %v2161_v14, %v267_v22 }
  0x7f   :  { %v2380_v7 = vperm.slane %v2297_v10, 3  ;;  %v2383_v8 = vperm.slane %v2325_v28, 5  ;;  %v2400_v21 = vperm.slane %v2325_v28, 3  ;;  %v2403_v22 = vperm.slane %v2330_v29, 3 }
  0x80   :  { %340 = vmatpush.msra.mxu0 %v272_v23  ;;  %369 = vmatpush.msra.mxu1 %v273_v24  ;;  %v2407_v23 = vperm.slane %v2330_v29, 2 }
  0x81   :  { %398 = vmatpush.msra.mxu2 %v274_v25  ;;  %427 = vmatpush.msra.mxu3 %v275_v26  ;;  %4052 = vst [vmem:[#allocation12_spill] sm:$0xff] %v2380_v7 }
  0x82   :  { %341 = vmatpush.msra.mxu0 %v242_v30  ;;  %4053 = vst [vmem:[#allocation13_spill] sm:$0xff] %v2383_v8 }
  0x83   :  { %4055 = vst [vmem:[#allocation15_spill] sm:$0xff] %v2400_v21 }
  0x84   :  { %v227_v36 = vpop.permute.xlu1 %226  ;;  %v225_v37 = vpop.permute.xlu0 %224  ;;  %4056 = vst [vmem:[#allocation16_spill] sm:$0xff] %v2403_v22 }
  0x85   :  { %v230_v39 = vsel %vm228_vm1, %v223_v5, %v225_v37  ;;  %v231_v40 = vsel %vm228_vm1, %v225_v37, %v227_v36  ;;  %v237_v41 = vsel %vm228_vm1, %v227_v36, %v221_v4  ;;  %v130_v54 = vpop.permute.xlu2 %129  ;;  %4057 = vst [vmem:[#allocation17_spill] sm:$0xff] %v2407_v23 }
  0x86   :  { %v243_v42 = vmul.f32 %v2334_v31, %v230_v39  ;;  %v244_v43 = vmul.f32 %v2337_v32, %v231_v40  ;;  %v245_v44 = vmul.f32 %v2340_v33, %v237_v41  ;;  %v2418_v39 = vperm.slane %v2297_v10, 2 }
  0x87   :  { %v2421_v40 = vperm.slane %v2320_v27, 2  ;;  %v2424_v41 = vperm.slane %v2325_v28, 2 }
  0x88   :  { %370 = vmatpush.msra.mxu1 %v243_v42  ;;  %399 = vmatpush.msra.mxu2 %v244_v43  ;;  %4058 = vst [vmem:[#allocation18_spill] sm:$0xff] %v2418_v39 }
  0x89   :  { %428 = vmatpush.msra.mxu3 %v245_v44  ;;  %4059 = vst [vmem:[#allocation19_spill] sm:$0xff] %v2424_v41 }
  0x8b   :  { %429 = vmatpush.msra.mxu3 %v215_v45 }
  0x8c   :  { %v195_v49 = vpop.permute.xlu1 %194  ;;  %v193_v50 = vpop.permute.xlu0 %192 }
  0x8d   :  { %v199_v51 = vsel %vm198_vm2, %v191_v6, %v193_v50  ;;  %v200_v52 = vsel %vm198_vm2, %v193_v50, %v195_v49  ;;  %v201_v53 = vsel %vm198_vm2, %v195_v49, %v197_v11  ;;  %v97_v6 = vpop.permute.xlu2 %96  ;;  %v2386_v11 = vperm.slane %v2330_v29, 5 }
  0x8e   :  { %v212_v55 = vmul.f32 %v2354_v46, %v199_v51  ;;  %v213_v56 = vmul.f32 %v2357_v47, %v200_v52  ;;  %v214_v57 = vmul.f32 %v2360_v48, %v201_v53 }
  0x8f   :  { %4054 = vst [vmem:[#allocation14_spill] sm:$0xff] %v2386_v11 }
  0x90   :  { %342 = vmatpush.msra.mxu0 %v212_v55  ;;  %371 = vmatpush.msra.mxu1 %v213_v56  ;;  %v2436_v55 = vperm.slane %v2320_v27, 1 }
  0x91   :  { %400 = vmatpush.msra.mxu2 %v214_v57 }
  0x94   :  { %v163_v60 = vpop.permute.xlu1 %162  ;;  %v161_v61 = vpop.permute.xlu0 %160 }
  0x95   :  { %v169_v62 = vsel %vm168_vm3, %v161_v61, %v163_v60  ;;  %v170_v63 = vsel %vm168_vm3, %v163_v60, %v165_v35  ;;  %v104_v20 = vpop.permute.xlu2 %103 }
  0x96   :  { %v182_v4 = vmul.f32 %v2369_v58, %v169_v62  ;;  %v183_v5 = vmul.f32 %v2372_v59, %v170_v63  ;;  %v108_v25 = vsel %vm105_vm5, %v104_v20, %v97_v6 }
  0x98   :  { %343 = vmatpush.msra.mxu0 %v182_v4  ;;  %372 = vmatpush.msra.mxu1 %v183_v5  ;;  %v2443_v5 = vperm.slane %v2297_v10, 0 }
  0x9a   :  { %344 = vmatpush.msra.mxu0 %v2213_v1  ;;  %373 = vmatpush.msra.mxu1 %v2229_v3  ;;  %v2397_v3 = vperm.slane %v2320_v27, 3  ;;  %4061 = vst [vmem:[#allocation21_spill] sm:$0xff] %v2443_v5 }
  0x9c   :  { %v127_v12 = vpop.permute.xlu1 %126  ;;  %v167_v13 = vpop.permute.xlu0 %166 }
  0x9d   :  { %v143_v14 = vsel %vm135_vm4, %v127_v12, %v130_v54  ;;  %v171_v15 = vsel %vm168_vm3, %v165_v35, %v167_v13  ;;  %v177_v1 = vsel %vm168_vm3, %v167_v13, %v161_v61  ;;  %v72_v53 = vpop.permute.xlu2 %71 }
  0x9e   :  { %v148_v16 = vmul.f32 %v2380_v7, %v143_v14  ;;  %v184_v17 = vmul.f32 %v2383_v8, %v171_v15  ;;  %v185_v19 = vmul.f32 %v2386_v11, %v177_v1 }
  0xa0   :  { %345 = vmatpush.msra.mxu0 %v148_v16  ;;  %401 = vmatpush.msra.mxu2 %v184_v17 }
  0xa1   :  { %430 = vmatpush.msra.mxu3 %v185_v19 }
  0xa2   :  { %402 = vmatpush.msra.mxu2 %v2208_v0 }
  0xa3   :  { %431 = vmatpush.msra.mxu3 %v2224_v2  ;;  %v121_v2 = vmul.f32 %v2407_v23, %v108_v25  ;;  %v2465_v25 = vperm.slane %v2325_v28, 0 }
  0xa4   :  { %v134_v24 = vpop.permute.xlu1 %133  ;;  %v132_v26 = vpop.permute.xlu0 %131 }
  0xa5   :  { %v136_v0 = vsel %vm135_vm4, %v130_v54, %v132_v26  ;;  %v137_v30 = vsel %vm135_vm4, %v132_v26, %v134_v24  ;;  %v138_v35 = vsel %vm135_vm4, %v134_v24, %v127_v12  ;;  %v2433_v54 = vperm.slane %v2297_v10, 1  ;;  %v40_v4 = vpop.permute.xlu2 %39  ;;  %4065 = vst [vmem:[#allocation25_spill] sm:$0xff] %v2465_v25 }
  0xa6   :  { %v149_v36 = vmul.f32 %v2397_v3, %v136_v0  ;;  %v150_v37 = vmul.f32 %v2400_v21, %v137_v30  ;;  %v151_v38 = vmul.f32 %v2403_v22, %v138_v35  ;;  %v2449_v12 = vperm.slane %v2330_v29, 1 }
  0xa7   :  { %4060 = vst [vmem:[#allocation20_spill] sm:$0xff] %v2433_v54  ;;  %v2462_v24 = vperm.slane %v2320_v27, 0  ;;  %v2468_v26 = vperm.slane %v2330_v29, 0  ;;  %v282_v29 = vld [vmem:[%s3933_s2 + $0x10] sm:$0xff] }
  0xa8   :  { %374 = vmatpush.msra.mxu1 %v149_v36  ;;  %403 = vmatpush.msra.mxu2 %v150_v37  ;;  %4063 = vst [vmem:[#allocation23_spill] sm:$0xff] %v2449_v12 }
  0xa9   :  { %432 = vmatpush.msra.mxu3 %v151_v38  ;;  %4064 = vst [vmem:[#allocation24_spill] sm:$0xff] %v2462_v24 }
  0xaa   :  { %4066 = vst [vmem:[#allocation26_spill] sm:$0xff] %v2468_v26 }
  0xab   :  { %433 = vmatpush.msra.mxu3 %v121_v2 }
  0xac   :  { %v102_v42 = vpop.permute.xlu1 %101  ;;  %v100_v43 = vpop.permute.xlu0 %99 }
  0xad   :  { %v107_v44 = vsel %vm105_vm5, %v102_v42, %v104_v20  ;;  %v106_v45 = vsel %vm105_vm5, %v100_v43, %v102_v42  ;;  %v113_v49 = vsel %vm105_vm5, %v97_v6, %v100_v43  ;;  %v2446_v6 = vperm.slane %v2325_v28, 1  ;;  %v280_v20 = vld [vmem:[%s3933_s2] sm:$0xff]  ;;  %v281_v28 = vld [vmem:[%s3933_s2 + $0x8] sm:$0xff]  ;;  %v283_v42 = vld [vmem:[%s3933_s2 + $0x18] sm:$0xff] }
  0xae   :  { %v118_v50 = vmul.f32 %v2418_v39, %v113_v49  ;;  %v119_v51 = vmul.f32 %v2421_v40, %v106_v45  ;;  %v120_v52 = vmul.f32 %v2424_v41, %v107_v44 }
  0xaf   :  { %4062 = vst [vmem:[#allocation22_spill] sm:$0xff] %v2446_v6 }
  0xb0   :  { %346 = vmatpush.msra.mxu0 %v118_v50  ;;  %375 = vmatpush.msra.mxu1 %v119_v51 }
  0xb1   :  { %404 = vmatpush.msra.mxu2 %v120_v52 }
  0xb4   :  { %v70_v56 = vpop.permute.xlu1 %69  ;;  %v67_v57 = vpop.permute.xlu0 %66 }
  0xb5   :  { %v76_v60 = vsel %vm75_vm6, %v70_v56, %v72_v53  ;;  %v83_v61 = vsel %vm75_vm6, %v67_v57, %v70_v56 }
  0xb6   :  { %v88_v62 = vmul.f32 %v2433_v54, %v83_v61  ;;  %v89_v63 = vmul.f32 %v2436_v55, %v76_v60 }
  0xb8   :  { %347 = vmatpush.msra.mxu0 %v88_v62  ;;  %376 = vmatpush.msra.mxu1 %v89_v63 }
  0xbc   :  { %v34_v13 = vpop.permute.xlu1 %33  ;;  %v74_v14 = vpop.permute.xlu0 %73 }
  0xbd   :  { %v53_v15 = vsel %vm45_vm7, %v34_v13, %v40_v4  ;;  %v77_v1 = vsel %vm75_vm6, %v72_v53, %v74_v14  ;;  %v78_v16 = vsel %vm75_vm6, %v74_v14, %v67_v57 }
  0xbe   :  { %v58_v17 = vmul.f32 %v2443_v5, %v53_v15  ;;  %v90_v19 = vmul.f32 %v2446_v6, %v77_v1  ;;  %v91_v10 = vmul.f32 %v2449_v12, %v78_v16 }
  0xc0   :  { %348 = vmatpush.msra.mxu0 %v58_v17  ;;  %405 = vmatpush.msra.mxu2 %v90_v19 }
  0xc1   :  { %434 = vmatpush.msra.mxu3 %v91_v10  ;;  %2098 = vmatmul.msk.f32.vlgmr.msra.gmra.mxu0 %vm320_vm8, %v280_v20 }
  0xc4   :  { %v44_v0 = vpop.permute.xlu1 %43  ;;  %v42_v30 = vpop.permute.xlu0 %41 }
  0xc5   :  { %v48_v35 = vsel %vm45_vm7, %v44_v0, %v34_v13  ;;  %v46_v36 = vsel %vm45_vm7, %v40_v4, %v42_v30  ;;  %v47_v37 = vsel %vm45_vm7, %v42_v30, %v44_v0 }
  0xc6   :  { %v59_v38 = vmul.f32 %v2462_v24, %v46_v36  ;;  %v60_v2 = vmul.f32 %v2465_v25, %v47_v37  ;;  %v61_v27 = vmul.f32 %v2468_v26, %v48_v35 }
  0xc8   :  { %377 = vmatpush.msra.mxu1 %v59_v38  ;;  %406 = vmatpush.msra.mxu2 %v60_v2 }
  0xc9   :  { %435 = vmatpush.msra.mxu3 %v61_v27  ;;  %2102 = vmatmul.msk.f32.vlgmr.msra.gmra.mxu1 %vm320_vm8, %v280_v20 }
  0xca   :  { %2110 = vmatmul.msk.f32.vlgmr.msra.gmra.mxu3 %vm320_vm8, %v280_v20  ;;  %2106 = vmatmul.msk.f32.vlgmr.msra.gmra.mxu2 %vm320_vm8, %v280_v20 }
  0xcb   :  { %2099 = vmatmul.msk.f32.gmra.mxu0 %vm320_vm8, %v281_v28 }
  0xd1   :  { %2103 = vmatmul.msk.f32.gmra.mxu1 %vm320_vm8, %v281_v28 }
  0xd2   :  { %2107 = vmatmul.msk.f32.gmra.mxu2 %vm320_vm8, %v281_v28  ;;  %2111 = vmatmul.msk.f32.gmra.mxu3 %vm320_vm8, %v281_v28 }
  0xd3   :  { %2100 = vmatmul.msk.f32.gmra.mxu0 %vm320_vm8, %v282_v29 }
  0xd9   :  { %2104 = vmatmul.msk.f32.gmra.mxu1 %vm320_vm8, %v282_v29 }
  0xda   :  { %2108 = vmatmul.msk.f32.gmra.mxu2 %vm320_vm8, %v282_v29  ;;  %2112 = vmatmul.msk.f32.gmra.mxu3 %vm320_vm8, %v282_v29 }
  0xdb   :  { %2101 = vmatmul.msk.f32.gmra.mxu0 %vm320_vm8, %v283_v42 }
  0xe1   :  { %2105 = vmatmul.msk.f32.gmra.mxu1 %vm320_vm8, %v283_v42 }
  0xe2   :  { %2113 = vmatmul.msk.f32.gmra.mxu3 %vm320_vm8, %v283_v42  ;;  %2109 = vmatmul.msk.f32.gmra.mxu2 %vm320_vm8, %v283_v42 }
 0x13e   :  { %v350_v43 = vpop.f32.mrf.mxu0 }
 0x13f   :  { %v2500_v44 = vmax.f32 %v350_v43, 0.0 }
 0x141   :  { %4067 = vst [vmem:[#allocation27_spill] sm:$0xff] %v2500_v44  ;;  %793 = vrot.lane.b32.xlu2 %v2500_v44, %s2170_s29  ;;  %493 = vrot.lane.b32.xlu0 %v2500_v44, %s2173_s7 }
 0x146   :  { %v379_v45 = vpop.f32.mrf.mxu1 }
 0x147   :  { %v2506_v49 = vmax.f32 %v379_v45, 0.0 }
 0x148   :  { %v353_v60 = vpop.f32.mrf.mxu0 }
 0x149   :  { %4068 = vst [vmem:[#allocation28_spill] sm:$0xff] %v2506_v49  ;;  %495 = vrot.lane.b32.xlu1 %v2506_v49, %s2173_s7  ;;  %695 = vrot.lane.b32.xlu2 %v2506_v49, %s2171_s30  ;;  %v2550_v61 = vmax.f32 %v353_v60, 0.0 }
 0x14a   :  { %795 = vrot.lane.b32.xlu0 %v2506_v49, %s2170_s29 }
 0x14b   :  { %4070 = vst [vmem:[#allocation30_spill] sm:$0xff] %v2550_v61 }
 0x14d   :  { %v437_v50 = vpop.f32.mrf.mxu3  ;;  %v408_v52 = vpop.f32.mrf.mxu2 }
 0x14e   :  { %v2520_v51 = vmax.f32 %v437_v50, 0.0  ;;  %v2528_v53 = vmax.f32 %v408_v52, 0.0  ;;  %v382_v56 = vpop.f32.mrf.mxu1 }
 0x14f   :  { %v2542_v57 = vmax.f32 %v382_v56, 0.0 }
 0x150   :  { %v356_v4 = vpop.f32.mrf.mxu0 }
 0x151   :  { %1099 = vrot.lane.b32.xlu1 %v2506_v49, %s2167_s23  ;;  %997 = vrot.lane.b32.xlu2 %v2500_v44, %s2168_s28  ;;  %4069 = vst [vmem:[#allocation29_spill] sm:$0xff] %v2542_v57  ;;  %v2578_v13 = vmax.f32 %v356_v4, 0.0 }
 0x152   :  { %1097 = vrot.lane.b32.xlu0 %v2500_v44, %s2167_s23 }
 0x153   :  { %4071 = vst [vmem:[#allocation31_spill] sm:$0xff] %v2578_v13 }
 0x155   :  { %v411_v62 = vpop.f32.mrf.mxu2  ;;  %v440_v14 = vpop.f32.mrf.mxu3 }
 0x156   :  { %v2570_v63 = vmax.f32 %v411_v62, 0.0  ;;  %v2588_v1 = vmax.f32 %v440_v14, 0.0  ;;  %v385_v17 = vpop.f32.mrf.mxu1 }
 0x157   :  { %v2606_v10 = vmax.f32 %v385_v17, 0.0 }
 0x159   :  { %693 = vrot.lane.b32.xlu1 %v2500_v44, %s2171_s30  ;;  %469 = vrot.lane.b32.xlu2 %v2520_v51, %s2173_s7  ;;  %4074 = vst [vmem:[#allocation34_spill] sm:$0xff] %v2606_v10 }
 0x15a   :  { %999 = vrot.lane.b32.xlu0 %v2506_v49, %s2168_s28 }
 0x15d   :  { %v414_v28 = vpop.f32.mrf.mxu2  ;;  %v443_v50 = vpop.f32.mrf.mxu3 }
 0x15e   :  { %v2646_v45 = vmax.f32 %v414_v28, 0.0  ;;  %v2660_v62 = vmax.f32 %v443_v50, 0.0 }
 0x160   :  { %4082 = vst [vmem:[#allocation42_spill] sm:$0xff] %v2646_v45 }
 0x161   :  { %595 = vrot.lane.b32.xlu1 %v2506_v49, %s2172_s6  ;;  %497 = vrot.lane.b32.xlu2 %v2528_v53, %s2173_s7 }
 0x162   :  { %593 = vrot.lane.b32.xlu0 %v2500_v44, %s2172_s6 }
 0x165   :  { %v446_v59 = vpop.f32.mrf.mxu3 }
 0x166   :  { %v2750_v6 = vmax.f32 %v446_v59, 0.0 }
 0x169   :  { %899 = vrot.lane.b32.xlu1 %v2506_v49, %s2169_s1  ;;  %681 = vrot.lane.b32.xlu2 %v2520_v51, %s2171_s30 }
 0x16a   :  { %897 = vrot.lane.b32.xlu0 %v2500_v44, %s2169_s1 }
 0x171   :  { %501 = vrot.lane.b32.xlu1 %v2542_v57, %s2173_s7  ;;  %1107 = vrot.lane.b32.xlu2 %v2542_v57, %s2167_s23 }
 0x172   :  { %781 = vrot.lane.b32.xlu0 %v2520_v51, %s2170_s29 }
 0x179   :  { %801 = vrot.lane.b32.xlu1 %v2542_v57, %s2170_s29  ;;  %701 = vrot.lane.b32.xlu2 %v2542_v57, %s2171_s30 }
 0x17a   :  { %499 = vrot.lane.b32.xlu0 %v2550_v61, %s2173_s7 }
 0x181   :  { %905 = vrot.lane.b32.xlu2 %v2550_v61, %s2169_s1  ;;  %1105 = vrot.lane.b32.xlu1 %v2550_v61, %s2167_s23 }
 0x182   :  { %799 = vrot.lane.b32.xlu0 %v2550_v61, %s2170_s29 }
 0x189   :  { %1205 = vrot.lane.b32.xlu2 %v2550_v61, %s2166_s22  ;;  %699 = vrot.lane.b32.xlu1 %v2550_v61, %s2171_s30 }
 0x18a   :  { %1005 = vrot.lane.b32.xlu0 %v2550_v61, %s2168_s28 }
 0x191   :  { %503 = vrot.lane.b32.xlu2 %v2570_v63, %s2173_s7  ;;  %1007 = vrot.lane.b32.xlu1 %v2542_v57, %s2168_s28 }
 0x192   :  { %599 = vrot.lane.b32.xlu0 %v2550_v61, %s2172_s6 }
 0x199   :  { %601 = vrot.lane.b32.xlu1 %v2542_v57, %s2172_s6  ;;  %805 = vrot.lane.b32.xlu2 %v2578_v13, %s2170_s29 }
 0x19a   :  { %907 = vrot.lane.b32.xlu0 %v2542_v57, %s2169_s1 }
 0x19b   :  { %v2586_v15 = vpop.permute.xlu2 %793 }
 0x19c   :  { %4072 = vst [vmem:[#allocation32_spill] sm:$0xff] %v2586_v15 }
 0x1a1   :  { %783 = vrot.lane.b32.xlu1 %v2588_v1, %s2170_s29  ;;  %1113 = vrot.lane.b32.xlu2 %v2578_v13, %s2167_s23 }
 0x1a2   :  { %471 = vrot.lane.b32.xlu0 %v2588_v1, %s2173_s7 }
 0x1a3   :  { %v2596_v16 = vpop.permute.xlu2 %695 }
 0x1a9   :  { %583 = vrot.lane.b32.xlu1 %v2588_v1, %s2172_s6  ;;  %705 = vrot.lane.b32.xlu2 %v2578_v13, %s2171_s30 }
 0x1aa   :  { %683 = vrot.lane.b32.xlu0 %v2588_v1, %s2171_s30 }
 0x1ab   :  { %v2604_v19 = vpop.permute.xlu2 %997 }
 0x1ac   :  { %4073 = vst [vmem:[#allocation33_spill] sm:$0xff] %v2604_v19 }
 0x1b1   :  { %507 = vrot.lane.b32.xlu1 %v2606_v10, %s2173_s7  ;;  %1015 = vrot.lane.b32.xlu2 %v2606_v10, %s2168_s28 }
 0x1b2   :  { %505 = vrot.lane.b32.xlu0 %v2578_v13, %s2173_s7 }
 0x1b3   :  { %v470_v20 = vpop.permute.xlu2 %469  ;;  %v494_v0 = vpop.permute.xlu0 %493 }
 0x1b4   :  { %v2615_v30 = vsel %vm45_vm7, %v470_v20, %v494_v0 }
 0x1b5   :  { %4075 = vst [vmem:[#allocation35_spill] sm:$0xff] %v2615_v30 }
 0x1b9   :  { %1013 = vrot.lane.b32.xlu1 %v2578_v13, %s2168_s28  ;;  %607 = vrot.lane.b32.xlu2 %v2606_v10, %s2172_s6 }
 0x1ba   :  { %807 = vrot.lane.b32.xlu0 %v2606_v10, %s2170_s29 }
 0x1bb   :  { %v496_v35 = vpop.permute.xlu1 %495  ;;  %v498_v36 = vpop.permute.xlu2 %497 }
 0x1bc   :  { %v2624_v37 = vsel %vm45_vm7, %v494_v0, %v496_v35  ;;  %v2627_v38 = vsel %vm45_vm7, %v496_v35, %v498_v36  ;;  %v2630_v2 = vsel %vm45_vm7, %v498_v36, %v470_v20  ;;  %v2632_v27 = vpop.permute.xlu0 %795  ;;  %v359_v20 = vpop.f32.mrf.mxu0 }
 0x1bd   :  { %4076 = vst [vmem:[#allocation36_spill] sm:$0xff] %v2624_v37  ;;  %v388_v0 = vpop.f32.mrf.mxu1  ;;  %v817_v9 = vsel %vm135_vm4, %v2586_v15, %v2632_v27 }
 0x1be   :  { %4077 = vst [vmem:[#allocation37_spill] sm:$0xff] %v2627_v38  ;;  %v2686_v50 = vmax.f32 %v388_v0, 0.0 }
 0x1bf   :  { %4078 = vst [vmem:[#allocation38_spill] sm:$0xff] %v2630_v2  ;;  %v2688_v2 = vmax.f32 %v359_v20, 0.0 }
 0x1c0   :  { %4079 = vst [vmem:[#allocation39_spill] sm:$0xff] %v2632_v27 }
 0x1c1   :  { %605 = vrot.lane.b32.xlu1 %v2578_v13, %s2172_s6  ;;  %1213 = vrot.lane.b32.xlu2 %v2578_v13, %s2166_s22  ;;  %4086 = vst [vmem:[#allocation46_spill] sm:$0xff] %v2686_v50 }
 0x1c2   :  { %1115 = vrot.lane.b32.xlu0 %v2606_v10, %s2167_s23  ;;  %4087 = vst [vmem:[#allocation47_spill] sm:$0xff] %v2688_v2 }
 0x1c3   :  { %v2640_v29 = vpop.permute.xlu1 %1099  ;;  %v2642_v42 = vpop.permute.xlu2 %681 }
 0x1c4   :  { %4080 = vst [vmem:[#allocation40_spill] sm:$0xff] %v2642_v42  ;;  %v2644_v43 = vpop.permute.xlu0 %1097 }
 0x1c5   :  { %4081 = vst [vmem:[#allocation41_spill] sm:$0xff] %v2644_v43 }
 0x1c9   :  { %915 = vrot.lane.b32.xlu1 %v2606_v10, %s2169_s1  ;;  %509 = vrot.lane.b32.xlu2 %v2646_v45, %s2173_s7 }
 0x1ca   :  { %707 = vrot.lane.b32.xlu0 %v2606_v10, %s2171_s30 }
 0x1cb   :  { %v2654_v52 = vpop.permute.xlu1 %693  ;;  %v2656_v56 = vpop.permute.xlu2 %1107 }
 0x1cc   :  { %v2658_v60 = vpop.permute.xlu0 %999 }
 0x1d1   :  { %473 = vrot.lane.b32.xlu1 %v2660_v62, %s2173_s7  ;;  %785 = vrot.lane.b32.xlu2 %v2660_v62, %s2170_s29 }
 0x1d2   :  { %913 = vrot.lane.b32.xlu0 %v2578_v13, %s2169_s1 }
 0x1d3   :  { %v2668_v4 = vpop.permute.xlu1 %595  ;;  %v2670_v14 = vpop.permute.xlu2 %701 }
 0x1d4   :  { %v2672_v17 = vpop.permute.xlu0 %593 }
 0x1d9   :  { %685 = vrot.lane.b32.xlu1 %v2660_v62, %s2171_s30  ;;  %585 = vrot.lane.b32.xlu2 %v2660_v62, %s2172_s6 }
 0x1da   :  { %1215 = vrot.lane.b32.xlu0 %v2606_v10, %s2166_s22 }
 0x1db   :  { %v2680_v35 = vpop.permute.xlu1 %899  ;;  %v2682_v36 = vpop.permute.xlu2 %905 }
 0x1dc   :  { %4083 = vst [vmem:[#allocation43_spill] sm:$0xff] %v2680_v35  ;;  %v2684_v28 = vpop.permute.xlu0 %897 }
 0x1dd   :  { %4084 = vst [vmem:[#allocation44_spill] sm:$0xff] %v2682_v36 }
 0x1de   :  { %4085 = vst [vmem:[#allocation45_spill] sm:$0xff] %v2684_v28 }
 0x1e1   :  { %813 = vrot.lane.b32.xlu1 %v2686_v50, %s2170_s29  ;;  %1123 = vrot.lane.b32.xlu2 %v2686_v50, %s2167_s23 }
 0x1e2   :  { %811 = vrot.lane.b32.xlu0 %v2688_v2, %s2170_s29 }
 0x1e3   :  { %v502_v26 = vpop.permute.xlu1 %501  ;;  %v2696_v12 = vpop.permute.xlu2 %1205 }
 0x1e4   :  { %4088 = vst [vmem:[#allocation48_spill] sm:$0xff] %v2696_v12  ;;  %v2698_v23 = vpop.permute.xlu0 %781 }
 0x1e5   :  { %4089 = vst [vmem:[#allocation49_spill] sm:$0xff] %v2698_v23 }
 0x1e9   :  { %1021 = vrot.lane.b32.xlu2 %v2688_v2, %s2168_s28  ;;  %1121 = vrot.lane.b32.xlu1 %v2688_v2, %s2167_s23 }
 0x1ea   :  { %711 = vrot.lane.b32.xlu0 %v2688_v2, %s2171_s30 }
 0x1eb   :  { %v2706_v20 = vpop.permute.xlu1 %801  ;;  %v504_v0 = vpop.permute.xlu2 %503 }
 0x1ec   :  { %4090 = vst [vmem:[#allocation50_spill] sm:$0xff] %v2706_v20  ;;  %v2709_v22 = vsel %vm45_vm7, %v502_v26, %v504_v0  ;;  %v500_v10 = vpop.permute.xlu0 %499 }
 0x1ed   :  { %4091 = vst [vmem:[#allocation51_spill] sm:$0xff] %v2709_v22  ;;  %v2712_v11 = vsel %vm45_vm7, %v500_v10, %v502_v26 }
 0x1ee   :  { %4092 = vst [vmem:[#allocation52_spill] sm:$0xff] %v2712_v11 }
 0x1f1   :  { %611 = vrot.lane.b32.xlu2 %v2688_v2, %s2172_s6  ;;  %713 = vrot.lane.b32.xlu1 %v2686_v50, %s2171_s30 }
 0x1f2   :  { %1023 = vrot.lane.b32.xlu0 %v2686_v50, %s2168_s28 }
 0x1f3   :  { %v2720_v34 = vpop.permute.xlu1 %1105  ;;  %v2722_v8 = vpop.permute.xlu2 %805 }
 0x1f4   :  { %4093 = vst [vmem:[#allocation53_spill] sm:$0xff] %v2720_v34  ;;  %v2724_v33 = vpop.permute.xlu0 %799 }
 0x1f5   :  { %v820_v13 = vsel %vm135_vm4, %v2724_v33, %v2706_v20 }
 0x1f9   :  { %923 = vrot.lane.b32.xlu2 %v2686_v50, %s2169_s1  ;;  %921 = vrot.lane.b32.xlu1 %v2688_v2, %s2169_s1 }
 0x1fa   :  { %613 = vrot.lane.b32.xlu0 %v2686_v50, %s2172_s6 }
 0x1fb   :  { %v2732_v26 = vpop.permute.xlu1 %699  ;;  %v2734_v38 = vpop.permute.xlu2 %1113 }
 0x1fc   :  { %v2736_v22 = vpop.permute.xlu0 %1005 }
 0x1fd   :  { %4094 = vst [vmem:[#allocation54_spill] sm:$0xff] %v2736_v22 }
 0x201   :  { %1223 = vrot.lane.b32.xlu2 %v2686_v50, %s2166_s22  ;;  %1221 = vrot.lane.b32.xlu1 %v2688_v2, %s2166_s22 }
 0x202   :  { %511 = vrot.lane.b32.xlu0 %v2688_v2, %s2173_s7 }
 0x203   :  { %v2744_v25 = vpop.permute.xlu1 %1007  ;;  %v2746_v48 = vpop.permute.xlu2 %705 }
 0x204   :  { %v2748_v47 = vpop.permute.xlu0 %599 }
 0x209   :  { %475 = vrot.lane.b32.xlu2 %v2750_v6, %s2173_s7  ;;  %513 = vrot.lane.b32.xlu1 %v2686_v50, %s2173_s7 }
 0x20a   :  { %687 = vrot.lane.b32.xlu0 %v2750_v6, %s2171_s30 }
 0x20b   :  { %v2758_v31 = vpop.permute.xlu1 %601  ;;  %v2760_v30 = vpop.permute.xlu2 %1015 }
 0x20c   :  { %v2762_v41 = vpop.permute.xlu0 %907 }
 0x211   :  { %587 = vrot.lane.b32.xlu2 %v2750_v6, %s2172_s6  ;;  %787 = vrot.lane.b32.xlu1 %v2750_v6, %s2170_s29 }
 0x212   :  { %1207 = vrot.lane.b32.xlu0 %v2542_v57, %s2166_s22  ;;  %v417_v57 = vpop.f32.mrf.mxu2 }
 0x213   :  { %v2770_v59 = vpop.permute.xlu1 %783  ;;  %v2772_v50 = vpop.permute.xlu2 %607 }
 0x214   :  { %4095 = vst [vmem:[#allocation55_spill] sm:$0xff] %v2770_v59  ;;  %v472_v5 = vpop.permute.xlu0 %471 }
 0x215   :  { %v2775_v32 = vsel %vm45_vm7, %v504_v0, %v472_v5  ;;  %v2778_v54 = vsel %vm45_vm7, %v472_v5, %v500_v10  ;;  %v2792_v0 = vmax.f32 %v417_v57, 0.0 }
 0x216   :  { %4096 = vst [vmem:[#allocation56_spill] sm:$0xff] %v2775_v32 }
 0x217   :  { %4097 = vst [vmem:[#allocation57_spill] sm:$0xff] %v2778_v54 }
 0x218   :  { %4101 = vst [vmem:[#allocation61_spill] sm:$0xff] %v2792_v0 }
 0x219   :  { %1197 = vrot.lane.b32.xlu2 %v2500_v44, %s2166_s22  ;;  %581 = vrot.lane.b32.xlu1 %v2520_v51, %s2172_s6 }
 0x21a   :  { %1199 = vrot.lane.b32.xlu0 %v2506_v49, %s2166_s22 }
 0x21b   :  { %v2786_v21 = vpop.permute.xlu1 %583  ;;  %v2788_v42 = vpop.permute.xlu2 %1213 }
 0x21c   :  { %4098 = vst [vmem:[#allocation58_spill] sm:$0xff] %v2786_v21  ;;  %v2790_v39 = vpop.permute.xlu0 %683 }
 0x21d   :  { %4099 = vst [vmem:[#allocation59_spill] sm:$0xff] %v2788_v42 }
 0x21e   :  { %4100 = vst [vmem:[#allocation60_spill] sm:$0xff] %v2790_v39 }
 0x221   :  { %809 = vrot.lane.b32.xlu2 %v2646_v45, %s2170_s29  ;;  %815 = vrot.lane.b32.xlu1 %v2792_v0, %s2170_s29 }
 0x222   :  { %1125 = vrot.lane.b32.xlu0 %v2792_v0, %s2167_s23 }
 0x223   :  { %v508_v5 = vpop.permute.xlu1 %507  ;;  %v510_v10 = vpop.permute.xlu2 %509 }
 0x224   :  { %v2801_v32 = vsel %vm45_vm7, %v508_v5, %v510_v10  ;;  %v506_v49 = vpop.permute.xlu0 %505 }
 0x225   :  { %4102 = vst [vmem:[#allocation62_spill] sm:$0xff] %v2801_v32  ;;  %v2804_v54 = vsel %vm45_vm7, %v506_v49, %v508_v5 }
 0x226   :  { %4103 = vst [vmem:[#allocation63_spill] sm:$0xff] %v2804_v54 }
 0x229   :  { %803 = vrot.lane.b32.xlu2 %v2570_v63, %s2170_s29  ;;  %1127 = vrot.lane.b32.xlu1 %v2750_v6, %s2167_s23 }
 0x22a   :  { %1117 = vrot.lane.b32.xlu0 %v2646_v45, %s2167_s23 }
 0x22b   :  { %v2812_v57 = vpop.permute.xlu1 %1013  ;;  %v2814_v21 = vpop.permute.xlu2 %785 }
 0x22c   :  { %4104 = vst [vmem:[#allocation64_spill] sm:$0xff] %v2812_v57  ;;  %v2816_v39 = vpop.permute.xlu0 %807 }
 0x22d   :  { %4105 = vst [vmem:[#allocation65_spill] sm:$0xff] %v2814_v21 }
 0x22e   :  { %4106 = vst [vmem:[#allocation66_spill] sm:$0xff] %v2816_v39 }
 0x231   :  { %797 = vrot.lane.b32.xlu2 %v2528_v53, %s2170_s29  ;;  %1119 = vrot.lane.b32.xlu1 %v2660_v62, %s2167_s23 }
 0x232   :  { %1109 = vrot.lane.b32.xlu0 %v2570_v63, %s2167_s23 }
 0x233   :  { %v2824_v5 = vpop.permute.xlu1 %605  ;;  %v2826_v32 = vpop.permute.xlu2 %585 }
 0x234   :  { %4107 = vst [vmem:[#allocation67_spill] sm:$0xff] %v2826_v32  ;;  %v2828_v23 = vpop.permute.xlu0 %1115 }
 0x239   :  { %715 = vrot.lane.b32.xlu2 %v2792_v0, %s2171_s30  ;;  %1111 = vrot.lane.b32.xlu1 %v2588_v1, %s2167_s23 }
 0x23a   :  { %1101 = vrot.lane.b32.xlu0 %v2528_v53, %s2167_s23 }
 0x23b   :  { %v2836_v59 = vpop.permute.xlu1 %915  ;;  %v2838_v7 = vpop.permute.xlu2 %1123 }
 0x23c   :  { %v2840_v12 = vpop.permute.xlu0 %707 }
 0x241   :  { %709 = vrot.lane.b32.xlu2 %v2646_v45, %s2171_s30  ;;  %1103 = vrot.lane.b32.xlu1 %v2520_v51, %s2167_s23 }
 0x242   :  { %1025 = vrot.lane.b32.xlu0 %v2792_v0, %s2168_s28 }
 0x243   :  { %v474_v32 = vpop.permute.xlu1 %473  ;;  %v2848_v21 = vpop.permute.xlu2 %1021 }
 0x244   :  { %4108 = vst [vmem:[#allocation68_spill] sm:$0xff] %v2848_v21  ;;  %v2851_v37 = vsel %vm45_vm7, %v510_v10, %v474_v32  ;;  %v2854_v11 = vsel %vm45_vm7, %v474_v32, %v506_v49  ;;  %v2856_v54 = vpop.permute.xlu0 %913 }
 0x245   :  { %4109 = vst [vmem:[#allocation69_spill] sm:$0xff] %v2851_v37 }
 0x246   :  { %4110 = vst [vmem:[#allocation70_spill] sm:$0xff] %v2854_v11  ;;  %v823_v11 = vsel %vm135_vm4, %v2722_v8, %v2816_v39  ;;  %v1135_v39 = vsel %vm228_vm1, %v2734_v38, %v2828_v23 }
 0x247   :  { %v858_v2 = vmul.f32 %v823_v11, %v2397_v3  ;;  %v1173_v15 = vmul.f32 %v1135_v39, %v2310_v18 }
 0x249   :  { %703 = vrot.lane.b32.xlu2 %v2570_v63, %s2171_s30  ;;  %1027 = vrot.lane.b32.xlu1 %v2750_v6, %s2168_s28 }
 0x24a   :  { %1017 = vrot.lane.b32.xlu0 %v2646_v45, %s2168_s28 }
 0x24b   :  { %v2864_v44 = vpop.permute.xlu1 %685  ;;  %v2866_v24 = vpop.permute.xlu2 %611 }
 0x24c   :  { %4111 = vst [vmem:[#allocation71_spill] sm:$0xff] %v2864_v44  ;;  %v2868_v10 = vpop.permute.xlu0 %1215 }
 0x24d   :  { %4112 = vst [vmem:[#allocation72_spill] sm:$0xff] %v2868_v10 }
 0x251   :  { %697 = vrot.lane.b32.xlu2 %v2528_v53, %s2171_s30  ;;  %1019 = vrot.lane.b32.xlu1 %v2660_v62, %s2168_s28 }
 0x252   :  { %1009 = vrot.lane.b32.xlu0 %v2570_v63, %s2168_s28 }
 0x253   :  { %v2876_v32 = vpop.permute.xlu1 %813  ;;  %v2878_v49 = vpop.permute.xlu2 %923 }
 0x254   :  { %4113 = vst [vmem:[#allocation73_spill] sm:$0xff] %v2876_v32  ;;  %v2880_v37 = vpop.permute.xlu0 %811 }
 0x255   :  { %v826_v44 = vsel %vm135_vm4, %v2880_v37, %v2876_v32  ;;  %v850_v32 = vmul.f32 %v817_v9, %v2397_v3 }
 0x256   :  { %v862_v61 = vmul.f32 %v826_v44, %v2397_v3  ;;  %v854_v44 = vmul.f32 %v820_v13, %v2397_v3  ;;  %v1132_v13 = vsel %vm228_vm1, %v2720_v34, %v2656_v56 }
 0x257   :  { %v1169_v9 = vmul.f32 %v1132_v13, %v2310_v18 }
 0x258   :  { %1661 = vmatpush.msrb.mxu3 %v862_v61 }
 0x259   :  { %615 = vrot.lane.b32.xlu2 %v2792_v0, %s2172_s6  ;;  %1011 = vrot.lane.b32.xlu1 %v2588_v1, %s2168_s28 }
 0x25a   :  { %1001 = vrot.lane.b32.xlu0 %v2528_v53, %s2168_s28  ;;  %1662 = vmatpush.msrb.mxu3 %v858_v2 }
 0x25b   :  { %v2903_v20 = vpop.permute.xlu2 %1223  ;;  %v2905_v61 = vpop.permute.xlu1 %1121 }
 0x25c   :  { %v1138_v11 = vsel %vm228_vm1, %v2905_v61, %v2838_v7  ;;  %1663 = vmatpush.msrb.mxu3 %v854_v44  ;;  %v2910_v27 = vpop.permute.xlu0 %711  ;;  %v1129_v44 = vsel %vm228_vm1, %v2644_v43, %v2640_v29 }
 0x25d   :  { %v1177_v2 = vmul.f32 %v1138_v11, %v2310_v18 }
 0x25e   :  { %1664 = vmatpush.msrb.mxu3 %v850_v32 }
 0x25f   :  { %1579 = vmatpush.msrb.mxu1 %v1177_v2  ;;  %v1165_v2 = vmul.f32 %v1129_v44, %v2310_v18  ;;  %v1032_v18 = vsel %vm198_vm2, %v2736_v22, %v2744_v25  ;;  %v720_v44 = vsel %vm105_vm5, %v2732_v26, %v2670_v14 }
 0x261   :  { %609 = vrot.lane.b32.xlu2 %v2646_v45, %s2172_s6  ;;  %1003 = vrot.lane.b32.xlu1 %v2520_v51, %s2168_s28 }
 0x262   :  { %1580 = vmatpush.msrb.mxu1 %v1173_v15  ;;  %925 = vrot.lane.b32.xlu0 %v2792_v0, %s2169_s1  ;;  %v1035_v15 = vsel %vm198_vm2, %v2812_v57, %v2760_v30 }
 0x263   :  { %v2931_v3 = vpop.permute.xlu2 %475  ;;  %v2933_v32 = vpop.permute.xlu1 %713  ;;  %v1073_v57 = vmul.f32 %v1035_v15, %v2354_v46 }
 0x264   :  { %4114 = vst [vmem:[#allocation74_spill] sm:$0xff] %v2931_v3  ;;  %1581 = vmatpush.msrb.mxu1 %v1169_v9  ;;  %v726_v39 = vsel %vm105_vm5, %v2910_v27, %v2933_v32  ;;  %v2938_v11 = vpop.permute.xlu0 %1023  ;;  %v723_v9 = vsel %vm105_vm5, %v2746_v48, %v2840_v12 }
 0x265   :  { %v1038_v13 = vsel %vm198_vm2, %v2848_v21, %v2938_v11  ;;  %v762_v43 = vmul.f32 %v726_v39, %v2421_v40  ;;  %v1029_v39 = vsel %vm198_vm2, %v2604_v19, %v2658_v60  ;;  %v754_v19 = vmul.f32 %v720_v44, %v2421_v40 }
 0x266   :  { %1582 = vmatpush.msrb.mxu1 %v1165_v2  ;;  %v1077_v34 = vmul.f32 %v1038_v13, %v2354_v46  ;;  %v758_v2 = vmul.f32 %v723_v9, %v2421_v40  ;;  %v1065_v21 = vmul.f32 %v1029_v39, %v2354_v46  ;;  %v623_v44 = vsel %vm75_vm6, %v2824_v5, %v2772_v50 }
 0x267   :  { %1665 = vmatpush.msrb.mxu3 %v762_v43  ;;  %v717_v43 = vsel %vm105_vm5, %v2654_v52, %v2596_v16  ;;  %v617_v39 = vsel %vm75_vm6, %v2672_v17, %v2668_v4 }
 0x268   :  { %1583 = vmatpush.msrb.mxu1 %v1077_v34  ;;  %v1069_v34 = vmul.f32 %v1032_v18, %v2354_v46  ;;  %v750_v18 = vmul.f32 %v717_v43, %v2421_v40  ;;  %v932_v40 = vsel %vm168_vm3, %v2682_v36, %v2762_v41  ;;  %v658_v43 = vmul.f32 %v623_v44, %v2436_v55 }
 0x269   :  { %603 = vrot.lane.b32.xlu2 %v2570_v63, %s2172_s6  ;;  %927 = vrot.lane.b32.xlu1 %v2750_v6, %s2169_s1 }
 0x26a   :  { %917 = vrot.lane.b32.xlu0 %v2646_v45, %s2169_s1  ;;  %1584 = vmatpush.msrb.mxu1 %v1073_v57 }
 0x26b   :  { %1666 = vmatpush.msrb.mxu3 %v758_v2  ;;  %v2973_v15 = vpop.permute.xlu2 %587  ;;  %v2975_v13 = vpop.permute.xlu1 %921 }
 0x26c   :  { %4115 = vst [vmem:[#allocation75_spill] sm:$0xff] %v2973_v15  ;;  %v938_v9 = vsel %vm168_vm3, %v2975_v13, %v2878_v49  ;;  %1585 = vmatpush.msrb.mxu1 %v1069_v34  ;;  %v2981_v22 = vpop.permute.xlu0 %613  ;;  %v935_v34 = vsel %vm168_vm3, %v2856_v54, %v2836_v59 }
 0x26d   :  { %1667 = vmatpush.msrb.mxu3 %v754_v19  ;;  %v626_v57 = vsel %vm75_vm6, %v2866_v24, %v2981_v22  ;;  %v977_v2 = vmul.f32 %v938_v9, %v2369_v58  ;;  %v620_v19 = vsel %vm75_vm6, %v2748_v47, %v2758_v31  ;;  %v929_v9 = vsel %vm168_vm3, %v2684_v28, %v2680_v35  ;;  %v4117_v35 = vld [vmem:[#allocation4_spill] sm:$0xff] }
 0x26e   :  { %1586 = vmatpush.msrb.mxu1 %v1065_v21  ;;  %v662_v46 = vmul.f32 %v626_v57, %v2436_v55  ;;  %v973_v21 = vmul.f32 %v935_v34, %v2369_v58  ;;  %v654_v44 = vmul.f32 %v620_v19, %v2436_v55  ;;  %v650_v28 = vmul.f32 %v617_v39, %v2436_v55 }
 0x26f   :  { %1668 = vmatpush.msrb.mxu3 %v750_v18 }
 0x270   :  { %1587 = vmatpush.msrb.mxu1 %v977_v2  ;;  %v969_v2 = vmul.f32 %v932_v40, %v2369_v58 }
 0x271   :  { %1669 = vmatpush.msrb.mxu3 %v662_v46  ;;  %597 = vrot.lane.b32.xlu2 %v2528_v53, %s2172_s6 }
 0x272   :  { %919 = vrot.lane.b32.xlu1 %v2660_v62, %s2169_s1  ;;  %909 = vrot.lane.b32.xlu0 %v2570_v63, %s2169_s1 }
 0x273   :  { %1588 = vmatpush.msrb.mxu1 %v973_v21  ;;  %1670 = vmatpush.msrb.mxu3 %v658_v43  ;;  %v3016_v57 = vpop.permute.xlu2 %1197  ;;  %v3018_v18 = vpop.permute.xlu1 %1221  ;;  %v1235_v21 = vsel %vm258_vm0, %v2788_v42, %v2868_v10  ;;  %v965_v43 = vmul.f32 %v929_v9, %v2369_v58  ;;  %v4119_v58 = vld [vmem:[#allocation31_spill] sm:$0xff]  ;;  %v4120_v9 = vld [vmem:[#allocation30_spill] sm:$0xff]  ;;  %v4131_v10 = vld [vmem:[#allocation49_spill] sm:$0xff] }
 0x274   :  { %4116 = vst [vmem:[#allocation76_spill] sm:$0xff] %v3018_v18  ;;  %v1238_v34 = vsel %vm258_vm0, %v3018_v18, %v2903_v20  ;;  %v3025_v46 = vpop.permute.xlu0 %511  ;;  %v1273_v19 = vmul.f32 %v4117_v35, %v1235_v21  ;;  %v4118_v18 = vld [vmem:[#allocation47_spill] sm:$0xff] }
 0x275   :  { %1589 = vmatpush.msrb.mxu1 %v969_v2  ;;  %1671 = vmatpush.msrb.mxu3 %v654_v44  ;;  %v1277_v40 = vmul.f32 %v4117_v35, %v1238_v34  ;;  %v4122_v44 = vld [vmem:[#allocation27_spill] sm:$0xff] }
 0x276   :  { %v4123_v34 = vld [vmem:[#allocation63_spill] sm:$0xff] }
 0x277   :  { %1590 = vmatpush.msrb.mxu1 %v965_v43  ;;  %1672 = vmatpush.msrb.mxu3 %v650_v28  ;;  %v4124_v43 = vld [vmem:[#allocation52_spill] sm:$0xff] }
 0x278   :  { %1632 = vmatpush.msrb.mxu2 %v1277_v40 }
 0x279   :  { %1591 = vmatpush.msrb.mxu1 %v4118_v18  ;;  %515 = vrot.lane.b32.xlu2 %v2792_v0, %s2173_s7  ;;  %v4121_v18 = vld [vmem:[#allocation24_spill] sm:$0xff] }
 0x27a   :  { %911 = vrot.lane.b32.xlu1 %v2588_v1, %s2169_s1  ;;  %1633 = vmatpush.msrb.mxu2 %v1273_v19  ;;  %v558_v21 = vmul.f32 %v4123_v34, %v4121_v18  ;;  %v554_v40 = vmul.f32 %v4124_v43, %v4121_v18  ;;  %v4127_v43 = vld [vmem:[#allocation48_spill] sm:$0xff] }
 0x27b   :  { %901 = vrot.lane.b32.xlu0 %v2528_v53, %s2169_s1  ;;  %1592 = vmatpush.msrb.mxu1 %v4119_v58  ;;  %v3042_v55 = vpop.permute.xlu2 %809  ;;  %v3044_v28 = vpop.permute.xlu1 %513 }
 0x27c   :  { %v526_v35 = vsel %vm45_vm7, %v3025_v46, %v3044_v28  ;;  %v688_v39 = vpop.permute.xlu0 %687 }
 0x27d   :  { %1593 = vmatpush.msrb.mxu1 %v4120_v9  ;;  %v562_v2 = vmul.f32 %v526_v35, %v4121_v18  ;;  %v4125_v35 = vld [vmem:[#allocation36_spill] sm:$0xff] }
 0x27e   :  { %v550_v9 = vmul.f32 %v4125_v35, %v4121_v18 }
 0x27f   :  { %1594 = vmatpush.msrb.mxu1 %v4122_v44  ;;  %1673 = vmatpush.msrb.mxu3 %v562_v2  ;;  %v4126_v2 = vld [vmem:[#allocation65_spill] sm:$0xff] }
 0x280   :  { %v847_v44 = vsel %vm135_vm4, %v4126_v2, %v2722_v8  ;;  %v2162_v8 = vld [vmem:[%s3932_s0 + $0x20] ss:$0 sm:$0xff] }
 0x281   :  { %1225 = vrot.lane.b32.xlu2 %v2792_v0, %s2166_s22  ;;  %1674 = vmatpush.msrb.mxu3 %v558_v21  ;;  %v4130_v2 = vld [vmem:[#allocation32_spill] sm:$0xff] }
 0x282   :  { %903 = vrot.lane.b32.xlu1 %v2520_v51, %s2169_s1  ;;  %v845_v36 = vsel %vm135_vm4, %v4131_v10, %v4130_v2  ;;  %v4134_v10 = vld [vmem:[#allocation60_spill] sm:$0xff] }
 0x283   :  { %1217 = vrot.lane.b32.xlu0 %v2646_v45, %s2166_s22  ;;  %v3062_v19 = vpop.permute.xlu2 %803  ;;  %v788_v58 = vpop.permute.xlu1 %787  ;;  %1675 = vmatpush.msrb.mxu3 %v554_v40  ;;  %v4128_v45 = vld [vmem:[#allocation12_spill] sm:$0xff]  ;;  %v4129_v40 = vld [vmem:[#allocation55_spill] sm:$0xff] }
 0x284   :  { %v848_v34 = vsel %vm135_vm4, %v788_v58, %v2880_v37  ;;  %v3071_v21 = vpop.permute.xlu0 %1207  ;;  %v846_v18 = vsel %vm135_vm4, %v4129_v40, %v2724_v33  ;;  %v857_v37 = vmul.f32 %v847_v44, %v4128_v45  ;;  %v748_v33 = vsel %vm105_vm5, %v688_v39, %v2910_v27  ;;  %v4132_v44 = vld [vmem:[#allocation71_spill] sm:$0xff] }
 0x285   :  { %v1232_v42 = vsel %vm258_vm0, %v4127_v43, %v3071_v21  ;;  %1676 = vmatpush.msrb.mxu3 %v550_v9  ;;  %v861_v0 = vmul.f32 %v848_v34, %v4128_v45  ;;  %v853_v9 = vmul.f32 %v846_v18, %v4128_v45  ;;  %v849_v2 = vmul.f32 %v845_v36, %v4128_v45  ;;  %v4135_v36 = vld [vmem:[#allocation40_spill] sm:$0xff] }
 0x286   :  { %v1269_v35 = vmul.f32 %v2162_v8, %v1232_v42  ;;  %v747_v34 = vsel %vm105_vm5, %v4132_v44, %v2746_v48  ;;  %v746_v43 = vsel %vm105_vm5, %v4134_v10, %v2732_v26  ;;  %v745_v48 = vsel %vm105_vm5, %v4135_v36, %v2654_v52  ;;  %v4136_v26 = vld [vmem:[#allocation67_spill] sm:$0xff] }
 0x287   :  { %1538 = vmatpush.msrb.mxu0 %v861_v0 }
 0x288   :  { %1634 = vmatpush.msrb.mxu2 %v1269_v35  ;;  %v4133_v35 = vld [vmem:[#allocation18_spill] sm:$0xff] }
 0x289   :  { %1201 = vrot.lane.b32.xlu2 %v2528_v53, %s2166_s22  ;;  %1539 = vmatpush.msrb.mxu0 %v857_v37  ;;  %v761_v37 = vmul.f32 %v748_v33, %v4133_v35  ;;  %v757_v45 = vmul.f32 %v747_v34, %v4133_v35  ;;  %v648_v33 = vsel %vm75_vm6, %v2973_v15, %v2866_v24  ;;  %v4140_v15 = vld [vmem:[#allocation15_spill] sm:$0xff] }
 0x28a   :  { %1209 = vrot.lane.b32.xlu1 %v2570_v63, %s2166_s22 }
 0x28b   :  { %1227 = vrot.lane.b32.xlu0 %v2750_v6, %s2166_s22  ;;  %v3096_v42 = vpop.permute.xlu2 %797  ;;  %v3098_v0 = vpop.permute.xlu1 %581  ;;  %1540 = vmatpush.msrb.mxu0 %v853_v9 }
 0x28c   :  { %v3104_v18 = vpop.permute.xlu0 %1199 }
 0x28d   :  { %v1229_v27 = vsel %vm258_vm0, %v3016_v57, %v3104_v18  ;;  %1541 = vmatpush.msrb.mxu0 %v849_v2  ;;  %v753_v2 = vmul.f32 %v746_v43, %v4133_v35  ;;  %v4137_v43 = vld [vmem:[#allocation66_spill] sm:$0xff] }
 0x28e   :  { %v1265_v9 = vmul.f32 %v2162_v8, %v1229_v27  ;;  %v647_v8 = vsel %vm75_vm6, %v4136_v26, %v2824_v5  ;;  %v749_v27 = vmul.f32 %v745_v48, %v4133_v35  ;;  %v4142_v35 = vld [vmem:[#allocation58_spill] sm:$0xff] }
 0x28f   :  { %1542 = vmatpush.msrb.mxu0 %v761_v37  ;;  %v824_v37 = vsel %vm135_vm4, %v4137_v43, %v3042_v55  ;;  %v646_v48 = vsel %vm75_vm6, %v4142_v35, %v2748_v47  ;;  %v4143_v43 = vld [vmem:[#allocation50_spill] sm:$0xff] }
 0x290   :  { %1635 = vmatpush.msrb.mxu2 %v1265_v9  ;;  %v4139_v9 = vld [vmem:[#allocation73_spill] sm:$0xff] }
 0x291   :  { %1211 = vrot.lane.b32.xlu2 %v2588_v1, %s2166_s22  ;;  %1543 = vmatpush.msrb.mxu0 %v757_v45 }
 0x292   :  { %1219 = vrot.lane.b32.xlu1 %v2660_v62, %s2166_s22 }
 0x293   :  { %1203 = vrot.lane.b32.xlu0 %v2520_v51, %s2166_s22  ;;  %v716_v52 = vpop.permute.xlu2 %715  ;;  %v816_v34 = vpop.permute.xlu1 %815  ;;  %1544 = vmatpush.msrb.mxu0 %v753_v2  ;;  %v4141_v2 = vld [vmem:[#allocation20_spill] sm:$0xff] }
 0x294   :  { %v3135_v24 = vsel %vm105_vm5, %v716_v52, %v688_v39  ;;  %v827_v45 = vsel %vm135_vm4, %v4139_v9, %v816_v34  ;;  %v3140_v5 = vsel %vm135_vm4, %v816_v34, %v788_v58  ;;  %v1126_v26 = vpop.permute.xlu0 %1125  ;;  %v661_v10 = vmul.f32 %v648_v33, %v4141_v2 }
 0x295   :  { %4138 = vst [vmem:[#allocation4_spill] sm:$0xff] %v3135_v24  ;;  %v863_v36 = vmul.f32 %v827_v45, %v4140_v15  ;;  %1545 = vmatpush.msrb.mxu0 %v749_v27  ;;  %v821_v39 = vsel %vm135_vm4, %v4143_v43, %v3062_v19  ;;  %v859_v24 = vmul.f32 %v824_v37, %v4140_v15  ;;  %v4144_v27 = vld [vmem:[#allocation39_spill] sm:$0xff] }
 0x296   :  { %v657_v58 = vmul.f32 %v647_v8, %v4141_v2  ;;  %v645_v34 = vsel %vm75_vm6, %v3098_v0, %v2672_v17  ;;  %v855_v33 = vmul.f32 %v821_v39, %v4140_v15  ;;  %v818_v47 = vsel %vm135_vm4, %v4144_v27, %v3096_v42  ;;  %v4145_v39 = vld [vmem:[#allocation6_spill] sm:$0xff]  ;;  %v4147_v27 = vld [vmem:[#allocation19_spill] sm:$0xff] }
 0x297   :  { %1546 = vmatpush.msrb.mxu0 %v661_v10  ;;  %1784 = vmatpush.msra.mxu2 %v863_v36  ;;  %v653_v9 = vmul.f32 %v646_v48, %v4141_v2  ;;  %v3163_v10 = vld [vmem:[%s3934_s3] sm:$0xff]  ;;  %v548_v36 = vsel %vm45_vm7, %v2931_v3, %v3025_v46  ;;  %v727_v17 = vsel %vm105_vm5, %v2933_v32, %v716_v52  ;;  %v4146_v52 = vld [vmem:[#allocation21_spill] sm:$0xff]  ;;  %v3305_v3 = vld [vmem:[%s3934_s3 + $0x58] sm:$0xff] }
 0x298   :  { %1677 = vmatmul.f32.vlgmr.msrb.gmra.mxu3 %v3163_v10  ;;  %v851_v45 = vmul.f32 %v818_v47, %v4140_v15  ;;  %v4148_v15 = vld [vmem:[#allocation70_spill] sm:$0xff]  ;;  %v4149_v47 = vld [vmem:[#allocation57_spill] sm:$0xff]  ;;  %4155 = vst [vmem:[#allocation31_spill] sm:$0xff] %v3305_v3 }
 0x299   :  { %1547 = vmatpush.msrb.mxu0 %v657_v58  ;;  %1785 = vmatpush.msra.mxu2 %v859_v24  ;;  %v649_v24 = vmul.f32 %v645_v34, %v4141_v2  ;;  %v561_v58 = vmul.f32 %v548_v36, %v4146_v52  ;;  %v557_v2 = vmul.f32 %v4148_v15, %v4146_v52  ;;  %v3190_v34 = vld [vmem:[%s3934_s3 + $0x10] sm:$0xff] }
 0x29a   :  { %v553_v36 = vmul.f32 %v4149_v47, %v4146_v52  ;;  %2114 = vmatmul.msk.f32.vlgmr.msrb.gmra.mxu2 %vm1513_vm9, %v3190_v34 }
 0x29b   :  { %v3171_v8 = vpop.permute.xlu2 %709  ;;  %v3173_v37 = vpop.permute.xlu1 %1127  ;;  %1548 = vmatpush.msrb.mxu0 %v653_v9  ;;  %1786 = vmatpush.msra.mxu2 %v855_v33  ;;  %v763_v9 = vmul.f32 %v727_v17, %v4147_v27  ;;  %v1139_v33 = vsel %vm228_vm1, %v2838_v7, %v1126_v26  ;;  %v3200_v17 = vld [vmem:[%s3934_s3 + $0x8] sm:$0xff] }
 0x29c   :  { %v1140_v48 = vsel %vm228_vm1, %v1126_v26, %v3173_v37  ;;  %v1118_v43 = vpop.permute.xlu0 %1117  ;;  %v724_v46 = vsel %vm105_vm5, %v2840_v12, %v3171_v8  ;;  %1595 = vmatmul.f32.vlgmr.msrb.gmra.mxu1 %v3200_v17 }
 0x29d   :  { %v1179_v32 = vmul.f32 %v1140_v48, %v4145_v39  ;;  %1549 = vmatpush.msrb.mxu0 %v649_v24  ;;  %1787 = vmatpush.msra.mxu2 %v851_v45  ;;  %v759_v12 = vmul.f32 %v724_v46, %v4147_v27  ;;  %v3207_v24 = vld [vmem:[%s3934_s3 + $0x18] sm:$0xff]  ;;  %v1136_v7 = vsel %vm228_vm1, %v2828_v23, %v1118_v43 }
 0x29e   :  { %v4150_v48 = vld [vmem:[#allocation35_spill] sm:$0xff] }
 0x29f   :  { %1550 = vmatpush.msrb.mxu0 %v561_v58  ;;  %1825 = vmatpush.msra.mxu3 %v1179_v32  ;;  %v549_v46 = vmul.f32 %v4150_v48, %v4146_v52  ;;  %v4151_v32 = vld [vmem:[#allocation5_spill] sm:$0xff] }
 0x2a0   :  { %1788 = vmatpush.msra.mxu2 %v763_v9  ;;  %1680 = vmatmul.f32.gmra.mxu3 %v3207_v24  ;;  %v1178_v58 = vmul.f32 %v1139_v33, %v4151_v32  ;;  %v1174_v47 = vmul.f32 %v1136_v7, %v4151_v32  ;;  %v3240_v33 = vld [vmem:[%s3934_s3 + $0x20] sm:$0xff] }
 0x2a1   :  { %1551 = vmatpush.msrb.mxu0 %v557_v2 }
 0x2a2   :  { %1789 = vmatpush.msra.mxu2 %v759_v12 }
 0x2a3   :  { %v3212_v26 = vpop.permute.xlu2 %703  ;;  %v3214_v45 = vpop.permute.xlu1 %1119  ;;  %1552 = vmatpush.msrb.mxu0 %v553_v36 }
 0x2a4   :  { %v721_v9 = vsel %vm105_vm5, %v2670_v14, %v3212_v26  ;;  %v1137_v15 = vsel %vm228_vm1, %v1118_v43, %v3214_v45  ;;  %v1110_v23 = vpop.permute.xlu0 %1109  ;;  %v3233_v14 = vld [vmem:[%s3934_s3 + $0x28] sm:$0xff]  ;;  %1598 = vmatmul.f32.gmra.mxu1 %v3240_v33 }
 0x2a5   :  { %v755_v2 = vmul.f32 %v721_v9, %v4147_v27  ;;  %v1175_v12 = vmul.f32 %v1137_v15, %v4145_v39  ;;  %1553 = vmatpush.msrb.mxu0 %v549_v46  ;;  %v1133_v52 = vsel %vm228_vm1, %v2656_v56, %v1110_v23  ;;  %2115 = vmatmul.msk.f32.gmra.mxu2 %vm1513_vm9, %v3233_v14  ;;  %v3247_v56 = vld [vmem:[%s3934_s3 + $0x30] sm:$0xff]  ;;  %v2174_v9 = vmov 0   ;;  %v1465_v15 = vld [vmem:[%s3935_s4] sm:$0xff] }
 0x2a6   :  { %v1170_v43 = vmul.f32 %v1133_v52, %v4151_v32  ;;  %1554 = vmatmul.f32.vlgmr.msrb.gmra.mxu0 %v3163_v10  ;;  %2155 = vset.pattern.permute.xlu1 %v2174_v9 }
 0x2a7   :  { %1702 = vmatpush.msra.mxu0 %v1178_v58  ;;  %1790 = vmatpush.msra.mxu2 %v755_v2 }
 0x2a8   :  { %1826 = vmatpush.msra.mxu3 %v1175_v12  ;;  %1475 = vperm.xlu1 %2155, %v1465_v15  }
 0x2a9   :  { %1703 = vmatpush.msra.mxu0 %v1174_v47  ;;  %1683 = vmatmul.f32.gmra.mxu3 %v3247_v56 }
 0x2aa   :  { %2157 = vset.pattern.permute.xlu0 %v2174_v9  ;;  %2156 = vset.pattern.permute.xlu2 %v2174_v9  ;;  %v4153_v9 = vld [vmem:[#allocation22_spill] sm:$0xff] }
 0x2ab   :  { %1704 = vmatpush.msra.mxu0 %v1170_v43  ;;  %v3250_v36 = vpop.permute.xlu2 %697  ;;  %v3252_v7 = vpop.permute.xlu1 %1111 }
 0x2ac   :  { %v718_v48 = vsel %vm105_vm5, %v2596_v16, %v3250_v36  ;;  %v1134_v46 = vsel %vm228_vm1, %v1110_v23, %v3252_v7  ;;  %v1102_v58 = vpop.permute.xlu0 %1101  ;;  %v3271_v23 = vld [vmem:[%s3934_s3 + $0x40] sm:$0xff] }
 0x2ad   :  { %v751_v2 = vmul.f32 %v718_v48, %v4147_v27  ;;  %v1171_v12 = vmul.f32 %v1134_v46, %v4145_v39  ;;  %v1130_v47 = vsel %vm228_vm1, %v2640_v29, %v1102_v58  ;;  %4152 = vst [vmem:[#allocation47_spill] sm:$0xff] %v3271_v23  ;;  %v3276_v27 = vld [vmem:[%s3934_s3 + $0x38] sm:$0xff]  ;;  %2116 = vmatmul.msk.f32.gmra.mxu2 %vm1513_vm9, %v3271_v23  ;;  %v3284_v29 = vld [vmem:[%s3934_s3 + $0x48] sm:$0xff] }
 0x2ae   :  { %v1166_v16 = vmul.f32 %v1130_v47, %v4151_v32  ;;  %1557 = vmatmul.f32.gmra.mxu0 %v3207_v24  ;;  %1601 = vmatmul.f32.gmra.mxu1 %v3276_v27  ;;  %v4154_v47 = vld [vmem:[#allocation9_spill] sm:$0xff] }
 0x2af   :  { %1791 = vmatpush.msra.mxu2 %v751_v2  ;;  %1827 = vmatpush.msra.mxu3 %v1171_v12 }
 0x2b0   :  { %1705 = vmatpush.msra.mxu0 %v1166_v16 }
 0x2b1   :  { %1686 = vmatmul.f32.gmra.mxu3 %v3284_v29 }
 0x2b3   :  { %v3287_v32 = vpop.permute.xlu2 %615  ;;  %v3289_v52 = vpop.permute.xlu1 %1103 }
 0x2b4   :  { %v627_v43 = vsel %vm75_vm6, %v2981_v22, %v3287_v32  ;;  %v1131_v48 = vsel %vm228_vm1, %v1102_v58, %v3289_v52  ;;  %v1026_v46 = vpop.permute.xlu0 %1025  ;;  %v3310_v22 = vld [vmem:[%s3934_s3 + $0x50] sm:$0xff] }
 0x2b5   :  { %v663_v15 = vmul.f32 %v627_v43, %v4153_v9  ;;  %v1167_v2 = vmul.f32 %v1131_v48, %v4145_v39  ;;  %v1039_v12 = vsel %vm198_vm2, %v2938_v11, %v1026_v46  ;;  %4156 = vst [vmem:[#allocation30_spill] sm:$0xff] %v3310_v22  ;;  %2117 = vmatmul.msk.f32.gmra.mxu2 %vm1513_vm9, %v3305_v3  ;;  %v3318_v11 = vld [vmem:[%s3934_s3 + $0x60] sm:$0xff] }
 0x2b6   :  { %v1078_v16 = vmul.f32 %v1039_v12, %v4154_v47  ;;  %1560 = vmatmul.f32.gmra.mxu0 %v3247_v56  ;;  %1604 = vmatmul.f32.gmra.mxu1 %v3310_v22 }
 0x2b7   :  { %1792 = vmatpush.msra.mxu2 %v663_v15  ;;  %1828 = vmatpush.msra.mxu3 %v1167_v2  ;;  %v1467_v2 = vld [vmem:[%s3935_s4 + $0x10] sm:$0xff] }
 0x2b8   :  { %1706 = vmatpush.msra.mxu0 %v1078_v16  ;;  %v4157_v16 = vld [vmem:[#allocation10_spill] sm:$0xff]  ;;  %1485 = vperm.xlu0 %2157, %v1467_v2  }
 0x2b9   :  { %1689 = vmatmul.f32.gmra.mxu3 %v3318_v11 }
 0x2bb   :  { %v3321_v39 = vpop.permute.xlu2 %609  ;;  %v3323_v58 = vpop.permute.xlu1 %1027 }
 0x2bc   :  { %v624_v43 = vsel %vm75_vm6, %v2772_v50, %v3321_v39  ;;  %v1040_v48 = vsel %vm198_vm2, %v1026_v46, %v3323_v58  ;;  %v1018_v15 = vpop.permute.xlu0 %1017  ;;  %v3342_v50 = vld [vmem:[%s3934_s3 + $0x70] sm:$0xff]  ;;  %v3347_v46 = vld [vmem:[%s3934_s3 + $0x68] sm:$0xff] }
 0x2bd   :  { %v659_v12 = vmul.f32 %v624_v43, %v4153_v9  ;;  %v1079_v3 = vmul.f32 %v1040_v48, %v4157_v16  ;;  %v1036_v23 = vsel %vm198_vm2, %v2760_v30, %v1018_v15  ;;  %4158 = vst [vmem:[#allocation24_spill] sm:$0xff] %v3342_v50  ;;  %2118 = vmatmul.msk.f32.gmra.mxu2 %vm1513_vm9, %v3342_v50  ;;  %v3355_v30 = vld [vmem:[%s3934_s3 + $0x78] sm:$0xff] }
 0x2be   :  { %v1074_v35 = vmul.f32 %v1036_v23, %v4154_v47  ;;  %4159 = vst [vmem:[#allocation27_spill] sm:$0xff] %v3347_v46  ;;  %1563 = vmatmul.f32.gmra.mxu0 %v3284_v29  ;;  %1607 = vmatmul.f32.gmra.mxu1 %v3347_v46  ;;  %v1468_v50 = vld [vmem:[%s3935_s4 + $0x18] sm:$0xff] }
 0x2bf   :  { %1793 = vmatpush.msra.mxu2 %v659_v12  ;;  %1829 = vmatpush.msra.mxu3 %v1079_v3 }
 0x2c0   :  { %1707 = vmatpush.msra.mxu0 %v1074_v35  ;;  %1490 = vperm.xlu1 %2155, %v1468_v50  }
 0x2c1   :  { %1692 = vmatmul.f32.gmra.mxu3 %v3355_v30 }
 0x2c3   :  { %v3358_v3 = vpop.permute.xlu2 %603  ;;  %v3360_v23 = vpop.permute.xlu1 %1019 }
 0x2c4   :  { %4160 = vst [vmem:[#allocation63_spill] sm:$0xff] %v3358_v3  ;;  %v621_v35 = vsel %vm75_vm6, %v2758_v31, %v3358_v3  ;;  %v1037_v43 = vsel %vm198_vm2, %v1018_v15, %v3360_v23  ;;  %v1010_v48 = vpop.permute.xlu0 %1009  ;;  %v3379_v31 = vld [vmem:[%s3934_s3 + $0x88] sm:$0xff]  ;;  %v3384_v15 = vld [vmem:[%s3934_s3 + $0x80] sm:$0xff] }
 0x2c5   :  { %v655_v2 = vmul.f32 %v621_v35, %v4153_v9  ;;  %v1075_v12 = vmul.f32 %v1037_v43, %v4157_v16  ;;  %v1033_v46 = vsel %vm198_vm2, %v2744_v25, %v1010_v48  ;;  %4161 = vst [vmem:[#allocation52_spill] sm:$0xff] %v3379_v31  ;;  %2119 = vmatmul.msk.f32.gmra.mxu2 %vm1513_vm9, %v3379_v31  ;;  %v3392_v25 = vld [vmem:[%s3934_s3 + $0x90] sm:$0xff] }
 0x2c6   :  { %v1070_v22 = vmul.f32 %v1033_v46, %v4154_v47  ;;  %4162 = vst [vmem:[#allocation36_spill] sm:$0xff] %v3384_v15  ;;  %1566 = vmatmul.f32.gmra.mxu0 %v3318_v11  ;;  %1610 = vmatmul.f32.gmra.mxu1 %v3384_v15  ;;  %v1466_v15 = vld [vmem:[%s3935_s4 + $0x8] sm:$0xff] }
 0x2c7   :  { %1794 = vmatpush.msra.mxu2 %v655_v2  ;;  %1830 = vmatpush.msra.mxu3 %v1075_v12 }
 0x2c8   :  { %1708 = vmatpush.msra.mxu0 %v1070_v22  ;;  %1480 = vperm.xlu2 %2156, %v1466_v15  }
 0x2c9   :  { %1695 = vmatmul.f32.gmra.mxu3 %v3392_v25 }
 0x2cb   :  { %v598_v50 = vpop.permute.xlu2 %597  ;;  %v3395_v46 = vpop.permute.xlu1 %1011 }
 0x2cc   :  { %v618_v22 = vsel %vm75_vm6, %v2668_v4, %v598_v50  ;;  %v3402_v35 = vsel %vm75_vm6, %v598_v50, %v3098_v0  ;;  %v1034_v43 = vsel %vm198_vm2, %v1010_v48, %v3395_v46  ;;  %v1002_v2 = vpop.permute.xlu0 %1001  ;;  %v3417_v0 = vld [vmem:[%s3934_s3 + $0xa0] sm:$0xff]  ;;  %v4166_v50 = vld [vmem:[#allocation25_spill] sm:$0xff] }
 0x2cd   :  { %4163 = vst [vmem:[#allocation12_spill] sm:$0xff] %v3402_v35  ;;  %v651_v12 = vmul.f32 %v618_v22, %v4153_v9  ;;  %v1071_v31 = vmul.f32 %v1034_v43, %v4157_v16  ;;  %v1030_v3 = vsel %vm198_vm2, %v2658_v60, %v1002_v2  ;;  %2120 = vmatmul.msk.f32.gmra.mxu2 %vm1513_vm9, %v3417_v0  ;;  %v3425_v60 = vld [vmem:[%s3934_s3 + $0xa8] sm:$0xff]  ;;  %v4168_v35 = vld [vmem:[#allocation11_spill] sm:$0xff] }
 0x2ce   :  { %v1066_v4 = vmul.f32 %v1030_v3, %v4154_v47  ;;  %4164 = vst [vmem:[#allocation55_spill] sm:$0xff] %v3417_v0  ;;  %1569 = vmatmul.f32.gmra.mxu0 %v3355_v30  ;;  %v3434_v3 = vld [vmem:[%s3934_s3 + $0x98] sm:$0xff] }
 0x2cf   :  { %1795 = vmatpush.msra.mxu2 %v651_v12  ;;  %1831 = vmatpush.msra.mxu3 %v1071_v31  ;;  %4165 = vst [vmem:[#allocation32_spill] sm:$0xff] %v3434_v3  ;;  %v1470_v12 = vld [vmem:[%s3935_s4 + $0x28] sm:$0xff] }
 0x2d0   :  { %1709 = vmatpush.msra.mxu0 %v1066_v4  ;;  %1613 = vmatmul.f32.gmra.mxu1 %v3434_v3  ;;  %v4176_v3 = vld [vmem:[#allocation41_spill] sm:$0xff] }
 0x2d1   :  { %1698 = vmatmul.f32.gmra.mxu3 %v3425_v60  ;;  %1500 = vperm.xlu1 %2155, %v1470_v12   ;;  %v1163_v12 = vsel %vm228_vm1, %v3214_v45, %v2734_v38  ;;  %v4174_v38 = vld [vmem:[#allocation53_spill] sm:$0xff] }
 0x2d2   :  { %v1162_v45 = vsel %vm228_vm1, %v3252_v7, %v4174_v38  ;;  %v1161_v7 = vsel %vm228_vm1, %v3289_v52, %v4176_v3  ;;  %v4179_v52 = vld [vmem:[#allocation64_spill] sm:$0xff] }
 0x2d3   :  { %v3427_v9 = vpop.permute.xlu2 %515  ;;  %v3429_v47 = vpop.permute.xlu1 %1003  ;;  %v1063_v3 = vsel %vm198_vm2, %v3360_v23, %v4179_v52  ;;  %v4181_v23 = vld [vmem:[#allocation33_spill] sm:$0xff] }
 0x2d4   :  { %v527_v48 = vsel %vm45_vm7, %v3044_v28, %v3427_v9  ;;  %v1031_v31 = vsel %vm198_vm2, %v1002_v2, %v3429_v47  ;;  %v926_v15 = vpop.permute.xlu0 %925  ;;  %v4167_v28 = vld [vmem:[#allocation62_spill] sm:$0xff] }
 0x2d5   :  { %v563_v22 = vmul.f32 %v527_v48, %v4166_v50  ;;  %v1067_v43 = vmul.f32 %v1031_v31, %v4157_v16  ;;  %v939_v4 = vsel %vm168_vm3, %v2878_v49, %v926_v15  ;;  %v559_v0 = vmul.f32 %v4167_v28, %v4166_v50  ;;  %v3456_v48 = vld [vmem:[%s3934_s3 + $0xb8] sm:$0xff] }
 0x2d6   :  { %v978_v2 = vmul.f32 %v939_v4, %v4168_v35  ;;  %4169 = vst [vmem:[#allocation71_spill] sm:$0xff] %v3456_v48  ;;  %v4170_v16 = vld [vmem:[#allocation51_spill] sm:$0xff]  ;;  %v1164_v49 = vsel %vm228_vm1, %v3173_v37, %v2905_v61  ;;  %1572 = vmatmul.f32.gmra.mxu0 %v3392_v25  ;;  %2121 = vmatmul.msk.f32.gmra.mxu2 %vm1513_vm9, %v3456_v48  ;;  %v3476_v61 = vld [vmem:[%s3934_s3 + $0xb0] sm:$0xff] }
 0x2d7   :  { %1796 = vmatpush.msra.mxu2 %v563_v22  ;;  %1832 = vmatpush.msra.mxu3 %v1067_v43  ;;  %v555_v31 = vmul.f32 %v4170_v16, %v4166_v50  ;;  %v4171_v22 = vld [vmem:[#allocation37_spill] sm:$0xff]  ;;  %4172 = vst [vmem:[#allocation18_spill] sm:$0xff] %v3476_v61  ;;  %v4173_v37 = vld [vmem:[#allocation7_spill] sm:$0xff] }
 0x2d8   :  { %1710 = vmatpush.msra.mxu0 %v978_v2  ;;  %v551_v43 = vmul.f32 %v4171_v22, %v4166_v50  ;;  %1616 = vmatmul.f32.gmra.mxu1 %v3476_v61  ;;  %v4175_v22 = vld [vmem:[#allocation13_spill] sm:$0xff]  ;;  %v1172_v38 = vmul.f32 %v1162_v45, %v4173_v37 }
 0x2d9   :  { %1797 = vmatpush.msra.mxu2 %v559_v0  ;;  %v1180_v0 = vmul.f32 %v1164_v49, %v4173_v37 }
 0x2db   :  { %v3471_v4 = vpop.permute.xlu2 %1225  ;;  %v928_v28 = vpop.permute.xlu1 %927  ;;  %1798 = vmatpush.msra.mxu2 %v555_v31  ;;  %v3490_v31 = vld [vmem:[%s3932_s0 + $0x28] ss:$0 sm:$0xff] }
 0x2dc   :  { %v1239_v2 = vsel %vm258_vm0, %v2903_v20, %v3471_v4  ;;  %v940_v50 = vsel %vm168_vm3, %v926_v15, %v928_v28  ;;  %v918_v16 = vpop.permute.xlu0 %917  ;;  %v1176_v15 = vmul.f32 %v1163_v12, %v4173_v37  ;;  %v4178_v12 = vld [vmem:[#allocation8_spill] sm:$0xff] }
 0x2dd   :  { %v1278_v49 = vmul.f32 %v3490_v31, %v1239_v2  ;;  %v979_v48 = vmul.f32 %v940_v50, %v4175_v22  ;;  %v936_v20 = vsel %vm168_vm3, %v2836_v59, %v918_v16  ;;  %1799 = vmatpush.msra.mxu2 %v551_v43  ;;  %v4177_v2 = vld [vmem:[#allocation68_spill] sm:$0xff]  ;;  %v1168_v43 = vmul.f32 %v1161_v7, %v4173_v37  ;;  %v4180_v37 = vld [vmem:[#allocation54_spill] sm:$0xff] }
 0x2de   :  { %v974_v61 = vmul.f32 %v936_v20, %v4168_v35  ;;  %v1064_v59 = vsel %vm198_vm2, %v3323_v58, %v4177_v2  ;;  %1575 = vmatmul.f32.gmra.mxu0 %v3425_v60  ;;  %1800 = vmatmul.f32.vlgmr.msra.gmra.mxu2 %v3163_v10  ;;  %v1062_v45 = vsel %vm198_vm2, %v3395_v46, %v4180_v37  ;;  %v1472_v46 = vld [vmem:[%s3935_s4 + $0x38] sm:$0xff] }
 0x2df   :  { %1948 = vmatpush.msrb.mxu2 %v1180_v0  ;;  %1755 = vmatpush.msra.mxu1 %v1278_v49  ;;  %v1080_v0 = vmul.f32 %v1064_v59, %v4178_v12  ;;  %v1061_v7 = vsel %vm198_vm2, %v3429_v47, %v4181_v23  ;;  %v4187_v23 = vld [vmem:[#allocation34_spill] sm:$0xff] }
 0x2e0   :  { %1833 = vmatpush.msra.mxu3 %v979_v48  ;;  %1711 = vmatpush.msra.mxu0 %v974_v61  ;;  %v1068_v47 = vmul.f32 %v1061_v7, %v4178_v12 }
 0x2e1   :  { %1949 = vmatpush.msrb.mxu2 %v1176_v15  ;;  %v1076_v15 = vmul.f32 %v1063_v3, %v4178_v12  ;;  %1510 = vperm.xlu0 %2157, %v1472_v46   ;;  %v4188_v46 = vld [vmem:[#allocation72_spill] sm:$0xff] }
 0x2e3   :  { %1950 = vmatpush.msrb.mxu2 %v1172_v38  ;;  %v964_v38 = vsel %vm168_vm3, %v928_v28, %v2975_v13  ;;  %v4184_v28 = vld [vmem:[#allocation43_spill] sm:$0xff] }
 0x2e4   :  { %v920_v48 = vpop.permute.xlu1 %919  ;;  %v910_v61 = vpop.permute.xlu0 %909 }
 0x2e5   :  { %1951 = vmatpush.msrb.mxu2 %v1168_v43  ;;  %v937_v50 = vsel %vm168_vm3, %v918_v16, %v920_v48  ;;  %v933_v58 = vsel %vm168_vm3, %v2762_v41, %v910_v61  ;;  %v1469_v41 = vld [vmem:[%s3935_s4 + $0x20] sm:$0xff]  ;;  %v1072_v16 = vmul.f32 %v1062_v45, %v4178_v12  ;;  %v963_v2 = vsel %vm168_vm3, %v920_v48, %v2856_v54  ;;  %v4182_v43 = vld [vmem:[#allocation14_spill] sm:$0xff] }
 0x2e6   :  { %v975_v49 = vmul.f32 %v937_v50, %v4175_v22  ;;  %v970_v20 = vmul.f32 %v933_v58, %v4168_v35  ;;  %1495 = vperm.xlu2 %2156, %v1469_v41   ;;  %1803 = vmatmul.f32.gmra.mxu2 %v3207_v24  ;;  %v4183_v50 = vld [vmem:[#allocation44_spill] sm:$0xff]  ;;  %v976_v37 = vmul.f32 %v963_v2, %v4182_v43  ;;  %v1202_v2 = vpop.permute.xlu2 %1201 }
 0x2e7   :  { %1952 = vmatpush.msrb.mxu2 %v1080_v0  ;;  %v980_v0 = vmul.f32 %v964_v38, %v4182_v43 }
 0x2e8   :  { %1712 = vmatpush.msra.mxu0 %v970_v20  ;;  %1834 = vmatpush.msra.mxu3 %v975_v49  ;;  %v4186_v20 = vld [vmem:[#allocation45_spill] sm:$0xff] }
 0x2e9   :  { %1953 = vmatpush.msrb.mxu2 %v1076_v15 }
 0x2eb   :  { %1954 = vmatpush.msrb.mxu2 %v1072_v16 }
 0x2ec   :  { %v912_v59 = vpop.permute.xlu1 %911 }
 0x2ed   :  { %v934_v52 = vsel %vm168_vm3, %v910_v61, %v912_v59  ;;  %v902_v3 = vpop.permute.xlu0 %901  ;;  %1955 = vmatpush.msrb.mxu2 %v1068_v47  ;;  %v962_v58 = vsel %vm168_vm3, %v912_v59, %v4183_v50  ;;  %v4185_v61 = vld [vmem:[#allocation46_spill] sm:$0xff]  ;;  %v4189_v47 = vld [vmem:[#allocation29_spill] sm:$0xff] }
 0x2ee   :  { %v971_v13 = vmul.f32 %v934_v52, %v4175_v22  ;;  %v930_v12 = vsel %vm168_vm3, %v4184_v28, %v902_v3  ;;  %v972_v48 = vmul.f32 %v962_v58, %v4182_v43  ;;  %1806 = vmatmul.f32.gmra.mxu2 %v3247_v56  ;;  %v1471_v59 = vld [vmem:[%s3935_s4 + $0x30] sm:$0xff]  ;;  %v1230_v58 = vsel %vm258_vm0, %v3104_v18, %v1202_v2  ;;  %v4193_v28 = vld [vmem:[#allocation76_spill] sm:$0xff] }
 0x2ef   :  { %v966_v54 = vmul.f32 %v930_v12, %v4168_v35  ;;  %1956 = vmatpush.msrb.mxu2 %v980_v0  ;;  %v4190_v0 = vld [vmem:[#allocation28_spill] sm:$0xff]  ;;  %1505 = vperm.xlu2 %2156, %v1471_v59   ;;  %v4192_v52 = vld [vmem:[#allocation42_spill] sm:$0xff] }
 0x2f0   :  { %1835 = vmatpush.msra.mxu3 %v971_v13 }
 0x2f1   :  { %1713 = vmatpush.msra.mxu0 %v966_v54  ;;  %1957 = vmatpush.msrb.mxu2 %v976_v37 }
 0x2f3   :  { %1714 = vmatpush.msra.mxu0 %v4185_v61  ;;  %1958 = vmatpush.msrb.mxu2 %v972_v48  ;;  %v1212_v48 = vpop.permute.xlu2 %1211  ;;  %v4195_v61 = vld [vmem:[#allocation16_spill] sm:$0xff] }
 0x2f4   :  { %v904_v45 = vpop.permute.xlu1 %903 }
 0x2f5   :  { %v931_v49 = vsel %vm168_vm3, %v902_v3, %v904_v45  ;;  %v961_v15 = vsel %vm168_vm3, %v904_v45, %v4186_v20  ;;  %1715 = vmatpush.msra.mxu0 %v4187_v23  ;;  %v1218_v35 = vpop.permute.xlu0 %1217  ;;  %v864_v45 = vmul.f32 %v3140_v5, %v4195_v61  ;;  %v4198_v23 = vld [vmem:[#allocation49_spill] sm:$0xff] }
 0x2f6   :  { %v967_v7 = vmul.f32 %v931_v49, %v4175_v22  ;;  %v968_v41 = vmul.f32 %v961_v15, %v4182_v43  ;;  %v1236_v16 = vsel %vm258_vm0, %v4188_v46, %v1218_v35  ;;  %v4191_v22 = vld [vmem:[#allocation61_spill] sm:$0xff]  ;;  %1809 = vmatmul.f32.gmra.mxu2 %v3284_v29  ;;  %v4197_v49 = vld [vmem:[#allocation59_spill] sm:$0xff] }
 0x2f7   :  { %v1274_v38 = vmul.f32 %v3490_v31, %v1236_v16  ;;  %1716 = vmatpush.msra.mxu0 %v4189_v47 }
 0x2f8   :  { %1836 = vmatpush.msra.mxu3 %v967_v7  ;;  %1959 = vmatpush.msrb.mxu2 %v968_v41 }
 0x2f9   :  { %1717 = vmatpush.msra.mxu0 %v4190_v0  ;;  %1756 = vmatpush.msra.mxu1 %v1274_v38 }
 0x2fa   :  { %1718 = vmatmul.f32.vlgmr.msra.gmra.mxu0 %v3200_v17  ;;  %1837 = vmatpush.msra.mxu3 %v4191_v22  ;;  %v4199_v22 = vld [vmem:[#allocation17_spill] sm:$0xff] }
 0x2fb   :  { %1960 = vmatpush.msrb.mxu2 %v2750_v6 }
 0x2fc   :  { %v1210_v43 = vpop.permute.xlu1 %1209  ;;  %1838 = vmatpush.msra.mxu3 %v4192_v52 }
 0x2fd   :  { %v1233_v3 = vsel %vm258_vm0, %v3071_v21, %v1210_v43  ;;  %1961 = vmatpush.msrb.mxu2 %v2660_v62  ;;  %v1228_v50 = vpop.permute.xlu0 %1227  ;;  %v2164_v21 = vld [vmem:[%s3932_s0 + $0x30] ss:$0 sm:$0xff]  ;;  %v2165_v62 = vld [vmem:[%s3932_s0 + $0x38] ss:$0 sm:$0xff] }
 0x2fe   :  { %v1270_v13 = vmul.f32 %v3490_v31, %v1233_v3  ;;  %v1240_v6 = vsel %vm258_vm0, %v3471_v4, %v1228_v50  ;;  %v1264_v12 = vsel %vm258_vm0, %v1228_v50, %v4193_v28  ;;  %1839 = vmatpush.msra.mxu3 %v2570_v63  ;;  %v1266_v4 = vmul.f32 %v3490_v31, %v1230_v58  ;;  %v4194_v63 = vld [vmem:[#allocation65_spill] sm:$0xff]  ;;  %v4204_v28 = vld [vmem:[#allocation67_spill] sm:$0xff] }
 0x2ff   :  { %v1279_v37 = vmul.f32 %v2164_v21, %v1240_v6  ;;  %v1280_v18 = vmul.f32 %v2165_v62, %v1264_v12  ;;  %1962 = vmatpush.msrb.mxu2 %v2588_v1  ;;  %v825_v54 = vsel %vm135_vm4, %v3042_v55, %v4194_v63  ;;  %v4196_v55 = vld [vmem:[#allocation48_spill] sm:$0xff]  ;;  %v625_v12 = vsel %vm75_vm6, %v3321_v39, %v4204_v28  ;;  %v4209_v63 = vld [vmem:[#allocation47_spill] sm:$0xff] }
 0x300   :  { %1757 = vmatpush.msra.mxu1 %v1270_v13  ;;  %1840 = vmatpush.msra.mxu3 %v2528_v53  ;;  %v822_v53 = vsel %vm135_vm4, %v3062_v19, %v4129_v40  ;;  %v860_v1 = vmul.f32 %v825_v54, %v4195_v61  ;;  %v1262_v31 = vsel %vm258_vm0, %v1212_v48, %v4196_v55  ;;  %v4210_v54 = vld [vmem:[#allocation74_spill] sm:$0xff]  ;;  %v4214_v55 = vld [vmem:[#allocation31_spill] sm:$0xff] }
 0x301   :  { %1878 = vmatpush.msrb.mxu0 %v1279_v37  ;;  %1963 = vmatpush.msrb.mxu2 %v2520_v51  ;;  %v819_v19 = vsel %vm135_vm4, %v3096_v42, %v4198_v23  ;;  %v1234_v40 = vsel %vm258_vm0, %v1210_v43, %v1212_v48  ;;  %v856_v46 = vmul.f32 %v822_v53, %v4195_v61  ;;  %v4212_v53 = vld [vmem:[#allocation27_spill] sm:$0xff] }
 0x302   :  { %1721 = vmatmul.f32.gmra.mxu0 %v3240_v33  ;;  %2001 = vmatpush.msrb.mxu3 %v1280_v18  ;;  %v1272_v38 = vmul.f32 %v2165_v62, %v1262_v31  ;;  %v852_v47 = vmul.f32 %v819_v19, %v4195_v61  ;;  %v1271_v59 = vmul.f32 %v2164_v21, %v1234_v40  ;;  %v4208_v18 = vld [vmem:[#allocation63_spill] sm:$0xff]  ;;  %v4211_v61 = vld [vmem:[#allocation12_spill] sm:$0xff]  ;;  %v4215_v31 = vld [vmem:[#allocation69_spill] sm:$0xff] }
 0x303   :  { %1758 = vmatpush.msra.mxu1 %v1266_v4  ;;  %1841 = vmatmul.f32.vlgmr.msra.gmra.mxu3 %v3200_v17  ;;  %v725_v42 = vsel %vm105_vm5, %v3171_v8, %v4132_v44  ;;  %v4202_v8 = vld [vmem:[#allocation40_spill] sm:$0xff]  ;;  %v528_v48 = vsel %vm45_vm7, %v3427_v9, %v4210_v54 }
 0x304   :  { %2122 = vmatmul.msk.f32.vlgmr.msra.gmra.mxu1 %vm1513_vm9, %v3190_v34  ;;  %v1220_v51 = vpop.permute.xlu1 %1219  ;;  %1812 = vmatmul.f32.gmra.mxu2 %v3318_v11  ;;  %v760_v44 = vmul.f32 %v725_v42, %v4199_v22  ;;  %v719_v50 = vsel %vm105_vm5, %v3250_v36, %v4202_v8  ;;  %v4206_v36 = vld [vmem:[#allocation23_spill] sm:$0xff]  ;;  %v4216_v9 = vld [vmem:[#allocation56_spill] sm:$0xff] }
 0x305   :  { %1907 = vmatpush.msrb.mxu1 %v864_v45  ;;  %v1237_v5 = vsel %vm258_vm0, %v1218_v35, %v1220_v51  ;;  %v1263_v20 = vsel %vm258_vm0, %v1220_v51, %v4197_v49  ;;  %v1204_v15 = vpop.permute.xlu0 %1203  ;;  %v752_v6 = vmul.f32 %v719_v50, %v4199_v22  ;;  %v652_v45 = vmul.f32 %v4211_v61, %v4206_v36  ;;  %v4213_v51 = vld [vmem:[#allocation26_spill] sm:$0xff]  ;;  %v4218_v19 = vld [vmem:[#allocation36_spill] sm:$0xff] }
 0x306   :  { %v1275_v7 = vmul.f32 %v2164_v21, %v1237_v5  ;;  %v1276_v41 = vmul.f32 %v2165_v62, %v1263_v20  ;;  %v1261_v16 = vsel %vm258_vm0, %v1204_v15, %v3016_v57  ;;  %v1231_v35 = vsel %vm258_vm0, %v1202_v2, %v1204_v15  ;;  %v4200_v57 = vld [vmem:[#allocation4_spill] sm:$0xff]  ;;  %v4217_v15 = vld [vmem:[#allocation38_spill] sm:$0xff] }
 0x307   :  { %1908 = vmatpush.msrb.mxu1 %v860_v1  ;;  %v1268_v0 = vmul.f32 %v2165_v62, %v1261_v16  ;;  %v764_v43 = vmul.f32 %v4200_v57, %v4199_v22  ;;  %v1267_v52 = vmul.f32 %v2164_v21, %v1231_v35  ;;  %v4201_v2 = vld [vmem:[#allocation60_spill] sm:$0xff]  ;;  %v4205_v21 = vld [vmem:[#allocation30_spill] sm:$0xff]  ;;  %v564_v1 = vmul.f32 %v528_v48, %v4213_v51 }
 0x308   :  { %1879 = vmatpush.msrb.mxu0 %v1275_v7  ;;  %2002 = vmatpush.msrb.mxu3 %v1276_v41  ;;  %v722_v3 = vsel %vm105_vm5, %v3212_v26, %v4201_v2  ;;  %v4203_v26 = vld [vmem:[#allocation75_spill] sm:$0xff]  ;;  %v4207_v62 = vld [vmem:[#allocation58_spill] sm:$0xff]  ;;  %v560_v5 = vmul.f32 %v4215_v31, %v4213_v51  ;;  %v556_v49 = vmul.f32 %v4216_v9, %v4213_v51  ;;  %v4219_v40 = vld [vmem:[#allocation24_spill] sm:$0xff] }
 0x309   :  { %1909 = vmatpush.msrb.mxu1 %v856_v46  ;;  %v756_v58 = vmul.f32 %v722_v3, %v4199_v22  ;;  %v628_v13 = vsel %vm75_vm6, %v3287_v32, %v4203_v26  ;;  %v622_v4 = vsel %vm75_vm6, %v4208_v18, %v4207_v62  ;;  %v660_v32 = vmul.f32 %v625_v12, %v4206_v36  ;;  %v4221_v42 = vld [vmem:[#allocation52_spill] sm:$0xff]  ;;  %v4222_v2 = vld [vmem:[#allocation18_spill] sm:$0xff] }
 0x30a   :  { %1724 = vmatmul.f32.gmra.mxu0 %v3276_v27  ;;  %2003 = vmatpush.msrb.mxu3 %v1272_v38  ;;  %v664_v37 = vmul.f32 %v628_v13, %v4206_v36  ;;  %v656_v39 = vmul.f32 %v622_v4, %v4206_v36  ;;  %v552_v23 = vmul.f32 %v4217_v15, %v4213_v51  ;;  %v4224_v36 = vld [vmem:[#allocation71_spill] sm:$0xff] }
 0x30b   :  { %1910 = vmatpush.msrb.mxu1 %v852_v47  ;;  %1880 = vmatpush.msrb.mxu0 %v1271_v59  ;;  %v4220_v47 = vld [vmem:[#allocation32_spill] sm:$0xff] }
 0x30c   :  { %2123 = vmatmul.msk.f32.gmra.mxu1 %vm1513_vm9, %v3233_v14  ;;  %2004 = vmatpush.msrb.mxu3 %v1268_v0 }
 0x30d   :  { %1911 = vmatpush.msrb.mxu1 %v764_v43  ;;  %1881 = vmatpush.msrb.mxu0 %v1267_v52 }
 0x30e   :  { %1844 = vmatmul.f32.gmra.mxu3 %v3240_v33  ;;  %1815 = vmatmul.f32.gmra.mxu2 %v3355_v30 }
 0x30f   :  { %1912 = vmatpush.msrb.mxu1 %v760_v44  ;;  %v4223_v44 = vld [vmem:[#allocation55_spill] sm:$0xff] }
 0x311   :  { %1913 = vmatpush.msrb.mxu1 %v756_v58 }
 0x312   :  { %1727 = vmatmul.f32.gmra.mxu0 %v4205_v21 }
 0x313   :  { %1914 = vmatpush.msrb.mxu1 %v752_v6 }
 0x314   :  { %2124 = vmatmul.msk.f32.gmra.mxu1 %vm1513_vm9, %v4209_v63 }
 0x315   :  { %1915 = vmatpush.msrb.mxu1 %v664_v37 }
 0x316   :  { %1847 = vmatmul.f32.gmra.mxu3 %v3276_v27  ;;  %1818 = vmatmul.f32.gmra.mxu2 %v3392_v25 }
 0x317   :  { %1916 = vmatpush.msrb.mxu1 %v660_v32 }
 0x319   :  { %1917 = vmatpush.msrb.mxu1 %v656_v39  ;;  %v1596_v20 = vpop.f32.mrf.mxu1 }
 0x31a   :  { %1730 = vmatmul.f32.gmra.mxu0 %v4212_v53  ;;  %v3673_v7 = vpop.permute.xlu1 %1475 }
 0x31b   :  { %1918 = vmatpush.msrb.mxu1 %v652_v45 }
 0x31c   :  { %2125 = vmatmul.msk.f32.gmra.mxu1 %vm1513_vm9, %v4214_v55 }
 0x31d   :  { %1919 = vmatpush.msrb.mxu1 %v564_v1  ;;  %v1637_v16 = vpop.f32.mrf.mxu2 }
 0x31e   :  { %1850 = vmatmul.f32.gmra.mxu3 %v4205_v21  ;;  %1821 = vmatmul.f32.gmra.mxu2 %v3425_v60 }
 0x31f   :  { %1920 = vmatpush.msrb.mxu1 %v560_v5 }
 0x321   :  { %1921 = vmatpush.msrb.mxu1 %v556_v49  ;;  %v1599_v46 = vpop.f32.mrf.mxu1 }
 0x322   :  { %1733 = vmatmul.f32.gmra.mxu0 %v4218_v19  ;;  %v3681_v22 = vpop.permute.xlu2 %1480 }
 0x323   :  { %1922 = vmatpush.msrb.mxu1 %v552_v23  ;;  %v1555_v41 = vpop.f32.mrf.mxu0 }
 0x324   :  { %2126 = vmatmul.msk.f32.gmra.mxu1 %vm1513_vm9, %v4219_v40  ;;  %v1556_v38 = vadd.f32 %v1555_v41, %v3673_v7 }
 0x326   :  { %1853 = vmatmul.f32.gmra.mxu3 %v4212_v53  ;;  %1964 = vmatmul.f32.vlgmr.msrb.gmra.mxu2 %v3200_v17  ;;  %v1597_v35 = vadd.f32 %v1596_v20, %v1556_v38 }
 0x328   :  { %v1638_v59 = vadd.f32 %v1637_v16, %v1597_v35  ;;  %v1640_v43 = vpop.f32.mrf.mxu2 }
 0x32a   :  { %1736 = vmatmul.f32.gmra.mxu0 %v4220_v47  ;;  %v2030_v0 = vmax.f32 %v1638_v59, 0.0  ;;  %v3692_v50 = vpop.permute.xlu0 %1485 }
 0x32b   :  { %v1558_v57 = vpop.f32.mrf.mxu0  ;;  %v1602_v17 = vpop.f32.mrf.mxu1 }
 0x32c   :  { %2127 = vmatmul.msk.f32.gmra.mxu1 %vm1513_vm9, %v4221_v42  ;;  %2062 = vst [vmem:[%s3936_s5] sm:$0xff] %v2030_v0  ;;  %v1559_v52 = vadd.f32 %v1558_v57, %v3681_v22 }
 0x32e   :  { %1856 = vmatmul.f32.gmra.mxu3 %v4218_v19  ;;  %1967 = vmatmul.f32.gmra.mxu2 %v3240_v33  ;;  %v1600_v3 = vadd.f32 %v1599_v46, %v1559_v52  ;;  %v3695_v33 = vpop.f32.mrf.mxu3 }
 0x330   :  { %v1641_v8 = vadd.f32 %v1640_v43, %v1600_v3  ;;  %v1643_v6 = vpop.f32.mrf.mxu2 }
 0x332   :  { %1739 = vmatmul.f32.gmra.mxu0 %v4222_v2  ;;  %v2034_v58 = vmax.f32 %v1641_v8, 0.0  ;;  %v3706_v62 = vpop.permute.xlu1 %1490 }
 0x333   :  { %v1561_v26 = vpop.f32.mrf.mxu0  ;;  %v1605_v13 = vpop.f32.mrf.mxu1 }
 0x334   :  { %2128 = vmatmul.msk.f32.gmra.mxu1 %vm1513_vm9, %v4223_v44  ;;  %2066 = vst [vmem:[%s3936_s5 + $0x20] sm:$0xff] %v2034_v58  ;;  %v1562_v28 = vadd.f32 %v1561_v26, %v3692_v50 }
 0x336   :  { %1859 = vmatmul.f32.gmra.mxu3 %v4220_v47  ;;  %1970 = vmatmul.f32.gmra.mxu2 %v3276_v27  ;;  %v1603_v12 = vadd.f32 %v1602_v17, %v1562_v28  ;;  %v3710_v4 = vpop.f32.mrf.mxu3 }
 0x338   :  { %v1644_v37 = vadd.f32 %v1643_v6, %v1603_v12  ;;  %v1646_v32 = vpop.f32.mrf.mxu2 }
 0x33a   :  { %2130 = vmatmul.msk.f32.vlgmr.msrb.gmra.mxu0 %vm1513_vm9, %v3190_v34  ;;  %v2038_v27 = vmax.f32 %v1644_v37, 0.0 }
 0x33b   :  { %v1564_v18 = vpop.f32.mrf.mxu0  ;;  %v1608_v54 = vpop.f32.mrf.mxu1 }
 0x33c   :  { %2129 = vmatmul.msk.f32.gmra.mxu1 %vm1513_vm9, %v4224_v36  ;;  %2070 = vst [vmem:[%s3936_s5 + $0x40] sm:$0xff] %v2038_v27  ;;  %v1565_v39 = vadd.f32 %v1564_v18, %v3706_v62  ;;  %v1682_v27 = vadd.f32 %v3710_v4, %v3681_v22 }
 0x33e   :  { %1862 = vmatmul.f32.gmra.mxu3 %v4222_v2  ;;  %1973 = vmatmul.f32.gmra.mxu2 %v4205_v21  ;;  %v1606_v48 = vadd.f32 %v1605_v13, %v1565_v39 }
 0x340   :  { %v1647_v61 = vadd.f32 %v1646_v32, %v1606_v48  ;;  %v3719_v45 = vpop.permute.xlu2 %1495  ;;  %v1649_v1 = vpop.f32.mrf.mxu2 }
 0x342   :  { %2131 = vmatmul.msk.f32.gmra.mxu0 %vm1513_vm9, %v3233_v14  ;;  %v2042_v21 = vmax.f32 %v1647_v61, 0.0 }
 0x343   :  { %v1567_v51 = vpop.f32.mrf.mxu0  ;;  %v1611_v9 = vpop.f32.mrf.mxu1 }
 0x344   :  { %1923 = vmatmul.f32.vlgmr.msrb.gmra.mxu1 %v3163_v10  ;;  %2074 = vst [vmem:[%s3936_s5 + $0x60] sm:$0xff] %v2042_v21  ;;  %v1568_v31 = vadd.f32 %v1567_v51, %v3719_v45  ;;  %v3730_v10 = vpop.f32.mrf.mxu3  ;;  %v3733_v49 = vpop.permute.xlu1 %1500 }
 0x345   :  { %v1685_v48 = vadd.f32 %v3730_v10, %v3692_v50 }
 0x346   :  { %2138 = vmatmul.msk.f32.vlgmr.msrb.gmra.mxu3 %vm1513_vm9, %v3190_v34  ;;  %1976 = vmatmul.f32.gmra.mxu2 %v4212_v53  ;;  %v1609_v5 = vadd.f32 %v1608_v54, %v1568_v31 }
 0x348   :  { %v1650_v34 = vadd.f32 %v1649_v1, %v1609_v5  ;;  %v1652_v15 = vpop.f32.mrf.mxu2 }
 0x349   :  { %v3747_v16 = vpop.permute.xlu2 %1505 }
 0x34a   :  { %2132 = vmatmul.msk.f32.gmra.mxu0 %vm1513_vm9, %v4209_v63  ;;  %v2046_v53 = vmax.f32 %v1650_v34, 0.0 }
 0x34b   :  { %v1570_v20 = vpop.f32.mrf.mxu0 }
 0x34c   :  { %1926 = vmatmul.f32.gmra.mxu1 %v3207_v24  ;;  %2078 = vst [vmem:[%s3936_s5 + $0x80] sm:$0xff] %v2046_v53  ;;  %v1571_v23 = vadd.f32 %v1570_v20, %v3733_v49  ;;  %v3745_v41 = vpop.f32.mrf.mxu3 }
 0x34d   :  { %v1614_v46 = vpop.f32.mrf.mxu1  ;;  %v1688_v5 = vadd.f32 %v3745_v41, %v3706_v62 }
 0x34e   :  { %2139 = vmatmul.msk.f32.gmra.mxu3 %vm1513_vm9, %v3233_v14  ;;  %1979 = vmatmul.f32.gmra.mxu2 %v4218_v19  ;;  %v1612_v24 = vadd.f32 %v1611_v9, %v1571_v23 }
 0x350   :  { %v1653_v14 = vadd.f32 %v1652_v15, %v1612_v24  ;;  %v1655_v35 = vpop.f32.mrf.mxu2 }
 0x352   :  { %2133 = vmatmul.msk.f32.gmra.mxu0 %vm1513_vm9, %v4214_v55  ;;  %v2050_v19 = vmax.f32 %v1653_v14, 0.0 }
 0x353   :  { %v1573_v38 = vpop.f32.mrf.mxu0  ;;  %v3759_v57 = vpop.permute.xlu0 %1510 }
 0x354   :  { %1929 = vmatmul.f32.gmra.mxu1 %v3247_v56  ;;  %2082 = vst [vmem:[%s3936_s5 + $0xa0] sm:$0xff] %v2050_v19  ;;  %v1574_v56 = vadd.f32 %v1573_v38, %v3747_v16 }
 0x355   :  { %v1617_v43 = vpop.f32.mrf.mxu1 }
 0x356   :  { %2140 = vmatmul.msk.f32.gmra.mxu3 %vm1513_vm9, %v4209_v63  ;;  %1982 = vmatmul.f32.gmra.mxu2 %v4220_v47  ;;  %v1615_v59 = vadd.f32 %v1614_v46, %v1574_v56  ;;  %v3763_v63 = vpop.f32.mrf.mxu3 }
 0x357   :  { %v1691_v24 = vadd.f32 %v3763_v63, %v3719_v45 }
 0x358   :  { %v1656_v0 = vadd.f32 %v1655_v35, %v1615_v59 }
 0x359   :  { %v1658_v52 = vpop.f32.mrf.mxu2 }
 0x35a   :  { %2134 = vmatmul.msk.f32.gmra.mxu0 %vm1513_vm9, %v4219_v40  ;;  %v2054_v47 = vmax.f32 %v1656_v0, 0.0 }
 0x35b   :  { %v1576_v17 = vpop.f32.mrf.mxu0 }
 0x35c   :  { %1932 = vmatmul.f32.gmra.mxu1 %v3284_v29  ;;  %2086 = vst [vmem:[%s3936_s5 + $0xc0] sm:$0xff] %v2054_v47  ;;  %v1577_v29 = vadd.f32 %v1576_v17, %v3759_v57 }
 0x35e   :  { %2141 = vmatmul.msk.f32.gmra.mxu3 %vm1513_vm9, %v4214_v55  ;;  %1985 = vmatmul.f32.gmra.mxu2 %v4222_v2  ;;  %v1618_v3 = vadd.f32 %v1617_v43, %v1577_v29  ;;  %v1693_v58 = vpop.f32.mrf.mxu3 }
 0x35f   :  { %v1694_v59 = vadd.f32 %v1693_v58, %v3733_v49 }
 0x360   :  { %v1659_v55 = vadd.f32 %v1658_v52, %v1618_v3 }
 0x361   :  { %v3778_v8 = vpop.f32.mrf.mxu2 }
 0x362   :  { %2135 = vmatmul.msk.f32.gmra.mxu0 %vm1513_vm9, %v4221_v42  ;;  %v2058_v2 = vmax.f32 %v1659_v55, 0.0 }
 0x364   :  { %1935 = vmatmul.f32.gmra.mxu1 %v3318_v11  ;;  %2090 = vst [vmem:[%s3936_s5 + $0xe0] sm:$0xff] %v2058_v2 }
 0x366   :  { %2142 = vmatmul.msk.f32.gmra.mxu3 %vm1513_vm9, %v4219_v40  ;;  %v1696_v40 = vpop.f32.mrf.mxu3 }
 0x367   :  { %v1697_v3 = vadd.f32 %v1696_v40, %v3747_v16 }
 0x369   :  { %v3785_v11 = vpop.f32.mrf.mxu2 }
 0x36a   :  { %2136 = vmatmul.msk.f32.gmra.mxu0 %vm1513_vm9, %v4223_v44 }
 0x36c   :  { %1938 = vmatmul.f32.gmra.mxu1 %v3355_v30 }
 0x36e   :  { %2143 = vmatmul.msk.f32.gmra.mxu3 %vm1513_vm9, %v4221_v42  ;;  %v3795_v30 = vpop.f32.mrf.mxu3  ;;  %v1679_v42 = vadd.f32 %v3695_v33, %v3673_v7 }
 0x371   :  { %v3792_v13 = vpop.f32.mrf.mxu2 }
 0x372   :  { %2137 = vmatmul.msk.f32.gmra.mxu0 %vm1513_vm9, %v4224_v36 }
 0x374   :  { %1941 = vmatmul.f32.gmra.mxu1 %v3392_v25 }
 0x376   :  { %2144 = vmatmul.msk.f32.gmra.mxu3 %vm1513_vm9, %v4223_v44 }
 0x377   :  { %v1719_v26 = vpop.f32.mrf.mxu0 }
 0x378   :  { %v1720_v28 = vadd.f32 %v1719_v26, %v1679_v42  ;;  %v1802_v42 = vadd.f32 %v3778_v8, %v3673_v7  ;;  %v1805_v8 = vadd.f32 %v3785_v11, %v3681_v22  ;;  %v1808_v11 = vadd.f32 %v3792_v13, %v3692_v50 }
 0x379   :  { %v3801_v37 = vpop.f32.mrf.mxu2 }
 0x37c   :  { %1944 = vmatmul.f32.gmra.mxu1 %v3425_v60 }
 0x37e   :  { %2145 = vmatmul.msk.f32.gmra.mxu3 %vm1513_vm9, %v4224_v36 }
 0x37f   :  { %v1722_v6 = vpop.f32.mrf.mxu0 }
 0x380   :  { %v1723_v33 = vadd.f32 %v1722_v6, %v1682_v27 }
 0x381   :  { %v1760_v12 = vpop.f32.mrf.mxu1 }
 0x382   :  { %v1761_v25 = vadd.f32 %v1760_v12, %v1720_v28 }
 0x384   :  { %v2031_v44 = vmax.f32 %v1761_v25, 0.0 }
 0x386   :  { %2063 = vst [vmem:[%s3936_s5 + $0x8] sm:$0xff] %v2031_v44  ;;  %v1842_v18 = vpop.f32.mrf.mxu3  ;;  %v1700_v44 = vadd.f32 %v3795_v30, %v3759_v57 }
 0x387   :  { %v1725_v60 = vpop.f32.mrf.mxu0  ;;  %v3808_v54 = vpop.f32.mrf.mxu2  ;;  %v1843_v25 = vadd.f32 %v1842_v18, %v1802_v42 }
 0x388   :  { %v1726_v61 = vadd.f32 %v1725_v60, %v1685_v48 }
 0x389   :  { %v1763_v32 = vpop.f32.mrf.mxu1 }
 0x38a   :  { %v1764_v39 = vadd.f32 %v1763_v32, %v1723_v33 }
 0x38c   :  { %v2035_v36 = vmax.f32 %v1764_v39, 0.0 }
 0x38e   :  { %2067 = vst [vmem:[%s3936_s5 + $0x28] sm:$0xff] %v2035_v36 }
 0x38f   :  { %v1728_v4 = vpop.f32.mrf.mxu0 }
 0x390   :  { %v1729_v34 = vadd.f32 %v1728_v4, %v1688_v5 }
 0x391   :  { %v1766_v21 = vpop.f32.mrf.mxu1  ;;  %v1845_v51 = vpop.f32.mrf.mxu3 }
 0x392   :  { %v1767_v1 = vadd.f32 %v1766_v21, %v1726_v61  ;;  %v3820_v9 = vpop.f32.mrf.mxu2  ;;  %v1846_v18 = vadd.f32 %v1845_v51, %v1805_v8 }
 0x394   :  { %v2039_v31 = vmax.f32 %v1767_v1, 0.0 }
 0x396   :  { %2071 = vst [vmem:[%s3936_s5 + $0x48] sm:$0xff] %v2039_v31 }
 0x397   :  { %v1731_v10 = vpop.f32.mrf.mxu0 }
 0x398   :  { %v1732_v14 = vadd.f32 %v1731_v10, %v1691_v24 }
 0x399   :  { %v1769_v53 = vpop.f32.mrf.mxu1  ;;  %v1848_v20 = vpop.f32.mrf.mxu3 }
 0x39a   :  { %v1770_v15 = vadd.f32 %v1769_v53, %v1729_v34  ;;  %v3827_v46 = vpop.f32.mrf.mxu2  ;;  %v1849_v51 = vadd.f32 %v1848_v20, %v1808_v11 }
 0x39c   :  { %v2043_v23 = vmax.f32 %v1770_v15, 0.0 }
 0x39e   :  { %2075 = vst [vmem:[%s3936_s5 + $0x68] sm:$0xff] %v2043_v23 }
 0x39f   :  { %v1734_v41 = vpop.f32.mrf.mxu0 }
 0x3a0   :  { %v1735_v63 = vadd.f32 %v1734_v41, %v1694_v59  ;;  %v1811_v41 = vadd.f32 %v3801_v37, %v3706_v62  ;;  %v1814_v37 = vadd.f32 %v3808_v54, %v3719_v45 }
 0x3a1   :  { %v1772_v19 = vpop.f32.mrf.mxu1  ;;  %v1851_v38 = vpop.f32.mrf.mxu3 }
 0x3a2   :  { %v1773_v35 = vadd.f32 %v1772_v19, %v1732_v14  ;;  %v3835_v52 = vpop.f32.mrf.mxu2 }
 0x3a4   :  { %v2047_v56 = vmax.f32 %v1773_v35, 0.0  ;;  %v1852_v35 = vadd.f32 %v1851_v38, %v1811_v41 }
 0x3a6   :  { %2079 = vst [vmem:[%s3936_s5 + $0x88] sm:$0xff] %v2047_v56 }
 0x3a7   :  { %v1737_v0 = vpop.f32.mrf.mxu0 }
 0x3a8   :  { %v1738_v2 = vadd.f32 %v1737_v0, %v1697_v3 }
 0x3a9   :  { %v1775_v47 = vpop.f32.mrf.mxu1  ;;  %v3833_v17 = vpop.f32.mrf.mxu3 }
 0x3aa   :  { %v1776_v43 = vadd.f32 %v1775_v47, %v1735_v63  ;;  %v1965_v12 = vpop.f32.mrf.mxu2  ;;  %v1855_v3 = vadd.f32 %v3833_v17, %v1814_v37 }
 0x3ac   :  { %v2051_v29 = vmax.f32 %v1776_v43, 0.0 }
 0x3ae   :  { %2083 = vst [vmem:[%s3936_s5 + $0xa8] sm:$0xff] %v2051_v29 }
 0x3af   :  { %v1740_v55 = vpop.f32.mrf.mxu0 }
 0x3b0   :  { %v1741_v27 = vadd.f32 %v1740_v55, %v1700_v44 }
 0x3b1   :  { %v1778_v58 = vpop.f32.mrf.mxu1  ;;  %v3841_v26 = vpop.f32.mrf.mxu3 }
 0x3b2   :  { %v1779_v6 = vadd.f32 %v1778_v58, %v1738_v2  ;;  %v1968_v48 = vpop.f32.mrf.mxu2 }
 0x3b4   :  { %v2055_v28 = vmax.f32 %v1779_v6, 0.0 }
 0x3b6   :  { %2087 = vst [vmem:[%s3936_s5 + $0xc8] sm:$0xff] %v2055_v28 }
 0x3b7   :  { %v1883_v40 = vpop.f32.mrf.mxu0 }
 0x3b8   :  { %v1884_v60 = vadd.f32 %v1883_v40, %v1843_v25 }
 0x3b9   :  { %v1781_v33 = vpop.f32.mrf.mxu1  ;;  %v3850_v32 = vpop.f32.mrf.mxu3 }
 0x3ba   :  { %v2032_v39 = vmax.f32 %v1884_v60, 0.0  ;;  %v1782_v36 = vadd.f32 %v1781_v33, %v1741_v27  ;;  %v1971_v15 = vpop.f32.mrf.mxu2 }
 0x3bc   :  { %2064 = vst [vmem:[%s3936_s5 + $0x10] sm:$0xff] %v2032_v39  ;;  %v2059_v30 = vmax.f32 %v1782_v36, 0.0 }
 0x3be   :  { %2091 = vst [vmem:[%s3936_s5 + $0xe8] sm:$0xff] %v2059_v30 }
 0x3bf   :  { %v1886_v4 = vpop.f32.mrf.mxu0 }
 0x3c0   :  { %v1887_v61 = vadd.f32 %v1886_v4, %v1846_v18 }
 0x3c1   :  { %v3860_v21 = vpop.f32.mrf.mxu3  ;;  %v1924_v1 = vpop.f32.mrf.mxu1 }
 0x3c2   :  { %v2036_v31 = vmax.f32 %v1887_v61, 0.0  ;;  %v1925_v5 = vadd.f32 %v1924_v1, %v3673_v7  ;;  %v1974_v29 = vpop.f32.mrf.mxu2 }
 0x3c4   :  { %2068 = vst [vmem:[%s3936_s5 + $0x30] sm:$0xff] %v2036_v31  ;;  %v1966_v10 = vadd.f32 %v1965_v12, %v1925_v5 }
 0x3c7   :  { %v1889_v34 = vpop.f32.mrf.mxu0 }
 0x3c8   :  { %v1890_v53 = vadd.f32 %v1889_v34, %v1849_v51 }
 0x3c9   :  { %v2006_v23 = vpop.f32.mrf.mxu3  ;;  %v1927_v24 = vpop.f32.mrf.mxu1 }
 0x3ca   :  { %v2040_v14 = vmax.f32 %v1890_v53, 0.0  ;;  %v2007_v19 = vadd.f32 %v2006_v23, %v1966_v10  ;;  %v1928_v13 = vadd.f32 %v1927_v24, %v3681_v22  ;;  %v1977_v25 = vpop.f32.mrf.mxu2 }
 0x3cc   :  { %2072 = vst [vmem:[%s3936_s5 + $0x50] sm:$0xff] %v2040_v14  ;;  %v2033_v7 = vmax.f32 %v2007_v19, 0.0  ;;  %v1969_v20 = vadd.f32 %v1968_v48, %v1928_v13 }
 0x3ce   :  { %2065 = vst [vmem:[%s3936_s5 + $0x18] sm:$0xff] %v2033_v7 }
 0x3cf   :  { %v1892_v56 = vpop.f32.mrf.mxu0 }
 0x3d0   :  { %v1893_v59 = vadd.f32 %v1892_v56, %v1852_v35 }
 0x3d1   :  { %v2009_v0 = vpop.f32.mrf.mxu3  ;;  %v1930_v63 = vpop.f32.mrf.mxu1 }
 0x3d2   :  { %v2044_v47 = vmax.f32 %v1893_v59, 0.0  ;;  %v2010_v22 = vadd.f32 %v2009_v0, %v1969_v20  ;;  %v1931_v43 = vadd.f32 %v1930_v63, %v3692_v50  ;;  %v1817_v50 = vadd.f32 %v3820_v9, %v3733_v49  ;;  %v1980_v48 = vpop.f32.mrf.mxu2 }
 0x3d4   :  { %2076 = vst [vmem:[%s3936_s5 + $0x70] sm:$0xff] %v2044_v47  ;;  %v2037_v38 = vmax.f32 %v2010_v22, 0.0  ;;  %v1972_v55 = vadd.f32 %v1971_v15, %v1931_v43  ;;  %v1858_v44 = vadd.f32 %v3841_v26, %v1817_v50 }
 0x3d6   :  { %2069 = vst [vmem:[%s3936_s5 + $0x38] sm:$0xff] %v2037_v38 }
 0x3d7   :  { %v1895_v2 = vpop.f32.mrf.mxu0 }
 0x3d8   :  { %v1896_v58 = vadd.f32 %v1895_v2, %v1855_v3 }
 0x3d9   :  { %v2012_v54 = vpop.f32.mrf.mxu3  ;;  %v1933_v42 = vpop.f32.mrf.mxu1 }
 0x3da   :  { %v2048_v6 = vmax.f32 %v1896_v58, 0.0  ;;  %v2013_v28 = vadd.f32 %v2012_v54, %v1972_v55  ;;  %v1934_v12 = vadd.f32 %v1933_v42, %v3706_v62  ;;  %v1820_v62 = vadd.f32 %v3827_v46, %v3747_v16  ;;  %v1983_v15 = vpop.f32.mrf.mxu2 }
 0x3dc   :  { %2080 = vst [vmem:[%s3936_s5 + $0x90] sm:$0xff] %v2048_v6  ;;  %v2041_v17 = vmax.f32 %v2013_v28, 0.0  ;;  %v1975_v40 = vadd.f32 %v1974_v29, %v1934_v12  ;;  %v1861_v30 = vadd.f32 %v3850_v32, %v1820_v62 }
 0x3de   :  { %2073 = vst [vmem:[%s3936_s5 + $0x58] sm:$0xff] %v2041_v17 }
 0x3df   :  { %v1898_v27 = vpop.f32.mrf.mxu0 }
 0x3e0   :  { %v1899_v60 = vadd.f32 %v1898_v27, %v1858_v44 }
 0x3e1   :  { %v2015_v9 = vpop.f32.mrf.mxu3  ;;  %v1936_v33 = vpop.f32.mrf.mxu1 }
 0x3e2   :  { %v2052_v8 = vmax.f32 %v1899_v60, 0.0  ;;  %v2016_v39 = vadd.f32 %v2015_v9, %v1975_v40  ;;  %v1937_v36 = vadd.f32 %v1936_v33, %v3719_v45  ;;  %v1823_v45 = vadd.f32 %v3835_v52, %v3759_v57  ;;  %v1986_v20 = vpop.f32.mrf.mxu2 }
 0x3e4   :  { %2084 = vst [vmem:[%s3936_s5 + $0xb0] sm:$0xff] %v2052_v8  ;;  %v2045_v26 = vmax.f32 %v2016_v39, 0.0  ;;  %v1978_v18 = vadd.f32 %v1977_v25, %v1937_v36  ;;  %v1864_v51 = vadd.f32 %v3860_v21, %v1823_v45 }
 0x3e6   :  { %2077 = vst [vmem:[%s3936_s5 + $0x78] sm:$0xff] %v2045_v26 }
 0x3e7   :  { %v1901_v4 = vpop.f32.mrf.mxu0 }
 0x3e8   :  { %v1902_v61 = vadd.f32 %v1901_v4, %v1861_v30 }
 0x3e9   :  { %v2018_v46 = vpop.f32.mrf.mxu3  ;;  %v1939_v1 = vpop.f32.mrf.mxu1 }
 0x3ea   :  { %v2056_v11 = vmax.f32 %v1902_v61, 0.0  ;;  %v2019_v31 = vadd.f32 %v2018_v46, %v1978_v18  ;;  %v1940_v5 = vadd.f32 %v1939_v1, %v3733_v49 }
 0x3ec   :  { %2088 = vst [vmem:[%s3936_s5 + $0xd0] sm:$0xff] %v2056_v11  ;;  %v2049_v32 = vmax.f32 %v2019_v31, 0.0  ;;  %v1981_v10 = vadd.f32 %v1980_v48, %v1940_v5 }
 0x3ee   :  { %2081 = vst [vmem:[%s3936_s5 + $0x98] sm:$0xff] %v2049_v32 }
 0x3ef   :  { %v1904_v34 = vpop.f32.mrf.mxu0 }
 0x3f0   :  { %v1905_v53 = vadd.f32 %v1904_v34, %v1864_v51 }
 0x3f1   :  { %v2021_v52 = vpop.f32.mrf.mxu3  ;;  %v1942_v23 = vpop.f32.mrf.mxu1 }
 0x3f2   :  { %v2060_v24 = vmax.f32 %v1905_v53, 0.0  ;;  %v2022_v41 = vadd.f32 %v2021_v52, %v1981_v10  ;;  %v1943_v49 = vadd.f32 %v1942_v23, %v3747_v16 }
 0x3f4   :  { %2092 = vst [vmem:[%s3936_s5 + $0xf0] sm:$0xff] %v2060_v24  ;;  %v2053_v14 = vmax.f32 %v2022_v41, 0.0  ;;  %v1984_v21 = vadd.f32 %v1983_v15, %v1943_v49 }
 0x3f6   :  { %2085 = vst [vmem:[%s3936_s5 + $0xb8] sm:$0xff] %v2053_v14 }
 0x3f9   :  { %v2024_v19 = vpop.f32.mrf.mxu3  ;;  %v1945_v13 = vpop.f32.mrf.mxu1 }
 0x3fa   :  { %v2025_v7 = vadd.f32 %v2024_v19, %v1984_v21  ;;  %v1946_v35 = vadd.f32 %v1945_v13, %v3759_v57 }
 0x3fc   :  { %v2057_v56 = vmax.f32 %v2025_v7, 0.0  ;;  %v1987_v16 = vadd.f32 %v1986_v20, %v1946_v35 }
 0x3fe   :  { %2089 = vst [vmem:[%s3936_s5 + $0xd8] sm:$0xff] %v2057_v56 }
 0x401   :  { %v2027_v59 = vpop.f32.mrf.mxu3 }
 0x402   :  { %v2028_v0 = vadd.f32 %v2027_v59, %v1987_v16 }
 0x404   :  { %v2061_v63 = vmax.f32 %v2028_v0, 0.0 }
 0x406   :  { %2093 = vst [vmem:[%s3936_s5 + $0xf8] sm:$0xff] %v2061_v63 }

</bundles_post_ra>
